<compile_context>
chip_gen: v7x
topology: tpu7x:2x2x1
jax: 0.10.0
libtpu: 0.0.40
codegen_flags: <defaults>
</compile_context>

<pallas_src>
import functools
import math

import jax
import jax.numpy as jnp
from jax import lax
from jax.experimental import pallas as pl
from jax.experimental.pallas import tpu as pltpu

LN_EPS = 1e-5
HP = jax.lax.Precision.HIGHEST


# --------------------------------------------------------------------------
# Kernel
# --------------------------------------------------------------------------
def _layer_norm(y, gamma, beta, inv_d):
    """Two-pass (centered) LayerNorm, matching torch.nn.LayerNorm."""
    mean = jnp.sum(y, axis=-1, keepdims=True) * inv_d
    c = y - mean
    var = jnp.sum(c * c, axis=-1, keepdims=True) * inv_d
    return c * lax.rsqrt(var + LN_EPS) * gamma + beta


def _encoder_kernel(num_layers, num_heads,
                    x_ref, pos_ref, wqkv_ref, bqkv_ref, wo_ref, w1_ref, w2_ref,
                    vec_ref, o_ref):
    """Full encoder stack for one batch element.

    x_ref    : (1, S, D)
    pos_ref  : (1, S, D)           position embedding (added once)
    wqkv_ref : (L, 3H, hd, D)      head-major Q|K|V weights
    bqkv_ref : (L, 3H, hd)         head-major Q|K|V biases
    wo_ref   : (L, H, hd, D)       out_linear weight, split by head
    w1_ref   : (L, D, 4D)          FFN weight 1
    w2_ref   : (L, 4D, D)          FFN weight 2
    vec_ref  : (L, 8, 4D)          rows: bo, g1, be1, bf1, bf2, g2, be2, pad
    o_ref    : (1, S, D)
    """
    S, D = x_ref.shape[1], x_ref.shape[2]
    H = num_heads
    hd = D // H
    scale = jnp.float32(1.0 / math.sqrt(hd))
    inv_d = jnp.float32(1.0 / D)

    # position embedding folded in once (layer 0 of the reference forward)
    x = x_ref[0].astype(jnp.float32) + pos_ref[0].astype(jnp.float32)      # (S, D)

    for l in range(num_layers):                      # static, unrolled at trace
        vec = vec_ref[l]                             # (8, 4D)
        bo = vec[0:1, :D]
        g1 = vec[1:2, :D]
        be1 = vec[2:3, :D]
        bf1 = vec[3:4, :]                            # (1, 4D)
        bf2 = vec[4:5, :D]
        g2 = vec[5:6, :D]
        be2 = vec[6:7, :D]

        # ---- Q/K/V for all heads in one batched einsum (no activation
        #      reshapes/transposes; head split lives in the weight layout) ----
        xb = jnp.broadcast_to(x, (3 * H, S, D))                            # (3H,S,D)
        qkv = jnp.einsum('hsd,hed->hse', xb, wqkv_ref[l],
                         preferred_element_type=jnp.float32)               # (3H,S,hd)
        qkv = qkv + bqkv_ref[l][:, None, :]
        q = qkv[:H]                                                         # (H,S,hd)
        k = qkv[H:2 * H]
        v = qkv[2 * H:]

        # ---- head-batched attention ----
        s = jnp.einsum('hqd,hkd->hqk', q, k,
                       preferred_element_type=jnp.float32) * scale          # (H,S,S)
        m = jnp.max(s, axis=-1, keepdims=True)
        e = jnp.exp(s - m)
        den = jnp.sum(e, axis=-1, keepdims=True)
        r = pl.reciprocal(den, approx=True)          # EUP slot
        r = r * (2.0 - den * r)                      # one Newton step -> ~f32 exact
        p_attn = e * r
        oh = jnp.einsum('hqk,hkd->hqd', p_attn, v,
                        preferred_element_type=jnp.float32)                 # (H,S,hd)
        # concat(heads) @ Wo  ==  sum_h  o_h @ Wo[h]
        attn = jnp.sum(jnp.einsum('hqd,hde->hqe', oh, wo_ref[l],
                                  preferred_element_type=jnp.float32),
                       axis=0) + bo                                          # (S, D)

        # ---- residual + LayerNorm 1 ----
        y = _layer_norm(x + attn, g1, be1, inv_d)

        # ---- feed-forward (D -> 4D -> D) + residual + LayerNorm 2 ----
        h1 = jnp.dot(y, w1_ref[l], preferred_element_type=jnp.float32) + bf1
        h1 = jnp.maximum(h1, 0.0)
        ff = jnp.dot(h1, w2_ref[l], preferred_element_type=jnp.float32) + bf2
        x = _layer_norm(y + ff, g2, be2, inv_d)

    o_ref[0] = x.astype(o_ref.dtype)


# --------------------------------------------------------------------------
# Wrapper
# --------------------------------------------------------------------------
def _pack_params(layer_params, D, H, Dh):
    """Stack per-layer params into a handful of layer-major operands."""
    hd = D // H

    def heads(w):
        # (in=D, out=D) -> (H, hd_out, D_in):  w_h[h, e, d] = w[d, h*hd + e]
        return w.reshape(D, H, hd).transpose(1, 2, 0)

    def row(a):
        a = a.reshape(1, -1)
        return jnp.pad(a, ((0, 0), (0, Dh - a.shape[1])))

    wqkv_l, bqkv_l, wo_l, w1_l, w2_l, vec_l = [], [], [], [], [], []
    for p in layer_params:
        wqkv_l.append(jnp.concatenate(
            [heads(p["wq"]), heads(p["wk"]), heads(p["wv"])], axis=0))       # (3H,hd,D)
        bqkv_l.append(jnp.concatenate(
            [p["bq"].reshape(H, hd), p["bk"].reshape(H, hd),
             p["bv"].reshape(H, hd)], axis=0))                               # (3H,hd)
        wo_l.append(p["wo"].reshape(H, hd, D))                               # (H,hd,D)
        w1_l.append(p["w1"])                                                 # (D,4D)
        w2_l.append(p["w2"])                                                 # (4D,D)
        vec_l.append(jnp.concatenate(
            [row(p["bo"]), row(p["g1"]), row(p["be1"]), row(p["bf1"]),
             row(p["bf2"]), row(p["g2"]), row(p["be2"]),
             jnp.zeros((1, Dh), jnp.float32)], axis=0))                      # (8,4D)

    stack = lambda xs: jnp.stack(xs, axis=0)
    return (stack(wqkv_l), stack(bqkv_l), stack(wo_l),
            stack(w1_l), stack(w2_l), stack(vec_l))


def transformer_encoder(x, position_embedding, layer_params, num_heads):
    """Mirrors TransformerEncoder.forward: x += pos_emb; then the layer stack.

    The whole forward pass runs inside ONE pallas_call (grid over batch only).
    """
    B, S, D = x.shape
    L = len(layer_params)
    Dh = 4 * D
    H = num_heads
    hd = D // H

    wqkv, bqkv, wo, w1, w2, vec = _pack_params(layer_params, D, H, Dh)

    def full_spec(a):
        nd = a.ndim
        return pl.BlockSpec(a.shape, lambda b, _nd=nd: (0,) * _nd)

    kernel = functools.partial(_encoder_kernel, L, H)

    # advisory cost so XLA overlaps neighbors with this custom call
    per_layer_batch_flops = (2 * S * D * 3 * D        # QKV projections
                             + 4 * H * S * S * hd     # scores + p@v
                             + 2 * S * D * D          # Wo fold
                             + 4 * S * D * Dh)        # FFN
    flops = int(B * L * per_layer_batch_flops)
    transcendentals = int(B * L * (H * S * S + H * S + 2 * S))
    weight_bytes = L * (3 * H * hd * D + 3 * H * hd + H * hd * D
                        + D * Dh + Dh * D + 8 * Dh)
    bytes_accessed = int(4 * (2 * B * S * D + S * D + weight_bytes))

    return pl.pallas_call(
        kernel,
        out_shape=jax.ShapeDtypeStruct((B, S, D), x.dtype),
        grid_spec=pltpu.PrefetchScalarGridSpec(
            num_scalar_prefetch=0,
            grid=(B,),
            in_specs=[pl.BlockSpec((1, S, D), lambda b: (b, 0, 0)),   # x
                      pl.BlockSpec((1, S, D), lambda b: (0, 0, 0)),   # pos emb
                      full_spec(wqkv), full_spec(bqkv), full_spec(wo),
                      full_spec(w1), full_spec(w2), full_spec(vec)],
            out_specs=pl.BlockSpec((1, S, D), lambda b: (b, 0, 0)),
        ),
        compiler_params=pltpu.CompilerParams(
            # "parallel" -> with B>=2 both v7x TensorCores are occupied; on
            # v5e/v6e this is simply a 2-step sequential grid loop.
            dimension_semantics=("parallel",),
        ),
        cost_estimate=pl.CostEstimate(
            flops=flops,
            transcendentals=transcendentals,
            bytes_accessed=bytes_accessed,
        ),
    )(x, position_embedding, wqkv, bqkv, wo, w1, w2, vec)


# --------------------------------------------------------------------------
# Pure-JAX reference (mirrors the PyTorch module)
# --------------------------------------------------------------------------
def _layer_norm_ref(y, gamma, beta):
    mean = jnp.mean(y, axis=-1, keepdims=True)
    var = jnp.mean((y - mean) ** 2, axis=-1, keepdims=True)
    return (y - mean) / jnp.sqrt(var + LN_EPS) * gamma + beta


def _encoder_layer_ref(x, p, num_heads):
    B, S, D = x.shape
    hd = D // num_heads
    q = jnp.einsum("bsd,de->bse", x, p["wq"], precision=HP) + p["bq"]
    k = jnp.einsum("bsd,de->bse", x, p["wk"], precision=HP) + p["bk"]
    v = jnp.einsum("bsd,de->bse", x, p["wv"], precision=HP) + p["bv"]
    q = q.reshape(B, S, num_heads, hd).transpose(0, 2, 1, 3)
    k = k.reshape(B, S, num_heads, hd).transpose(0, 2, 1, 3)
    v = v.reshape(B, S, num_heads, hd).transpose(0, 2, 1, 3)
    scores = jnp.einsum("bhsd,bhtd->bhst", q, k, precision=HP) / math.sqrt(hd)
    attn = jax.nn.softmax(scores, axis=-1)
    out = jnp.einsum("bhst,bhtd->bhsd", attn, v, precision=HP)
    out = out.transpose(0, 2, 1, 3).reshape(B, S, D)
    out = jnp.einsum("bsd,de->bse", out, p["wo"], precision=HP) + p["bo"]

    y = _layer_norm_ref(x + out, p["g1"], p["be1"])
    h = jax.nn.relu(jnp.einsum("bsd,df->bsf", y, p["w1"], precision=HP) + p["bf1"])
    ff = jnp.einsum("bsf,fd->bsd", h, p["w2"], precision=HP) + p["bf2"]
    return _layer_norm_ref(y + ff, p["g2"], p["be2"])


def transformer_encoder_ref(x, position_embedding, layer_params, num_heads):
    x = x + position_embedding
    for p in layer_params:
        x = _encoder_layer_ref(x, p, num_heads)
    return x


# --------------------------------------------------------------------------
# Demo / self-check
# --------------------------------------------------------------------------
if __name__ == "__main__":
    # Module config: input_dim=32, num_heads=4, num_layers=2, num_points (seq)=8
    B, S, D = 2, 8, 32
    num_heads, num_layers = 4, 2
    Dh = 4 * D

    key = jax.random.PRNGKey(0)
    key, kx, kp = jax.random.split(key, 3)
    x = jax.random.normal(kx, (B, S, D), dtype=jnp.float32)
    position_embedding = jax.random.normal(kp, (1, S, D), dtype=jnp.float32)

    def w(k, shape, scale=0.1):
        return scale * jax.random.normal(k, shape, dtype=jnp.float32)

    layer_params = []
    for _ in range(num_layers):
        key, *ks = jax.random.split(key, 17)
        # NOTE: weights are stored as (in, out), i.e. already transposed
        # relative to torch.nn.Linear's (out, in) layout.
        layer_params.append(dict(
            wq=w(ks[0], (D, D)),  bq=w(ks[1], (D,)),
            wk=w(ks[2], (D, D)),  bk=w(ks[3], (D,)),
            wv=w(ks[4], (D, D)),  bv=w(ks[5], (D,)),
            wo=w(ks[6], (D, D)),  bo=w(ks[7], (D,)),
            g1=1.0 + w(ks[8], (D,)),  be1=w(ks[9], (D,)),
            w1=w(ks[10], (D, Dh)), bf1=w(ks[11], (Dh,)),
            w2=w(ks[12], (Dh, D)), bf2=w(ks[13], (D,)),
            g2=1.0 + w(ks[14], (D,)), be2=w(ks[15], (D,)),
        ))

    out = transformer_encoder(x, position_embedding, layer_params, num_heads)
    out = jax.block_until_ready(out)

    ref = transformer_encoder_ref(x, position_embedding, layer_params, num_heads)
    assert out.shape == (B, S, D)
    assert jnp.allclose(out, ref, atol=1e-3, rtol=1e-3), "mismatch vs reference"

    print("KERNEL_OK")
</pallas_src>

<mosaic_0001>
module attributes {stable_mosaic.version = 11 : i64} {
  func.func @_encoder_kernel(%arg0: i32, %arg1: memref<1x8x32xf32, #tpu.memory_space<vmem>>, %arg2: memref<1x8x32xf32, #tpu.memory_space<vmem>>, %arg3: memref<2x12x8x32xf32, #tpu.memory_space<vmem>>, %arg4: memref<2x12x8xf32, #tpu.memory_space<vmem>>, %arg5: memref<2x4x8x32xf32, #tpu.memory_space<vmem>>, %arg6: memref<2x32x128xf32, #tpu.memory_space<vmem>>, %arg7: memref<2x128x32xf32, #tpu.memory_space<vmem>>, %arg8: memref<2x8x128xf32, #tpu.memory_space<vmem>>, %arg9: memref<1x8x32xf32, #tpu.memory_space<vmem>>) attributes {dimension_semantics = [#tpu.dimension_semantics<parallel>], iteration_bounds = array<i64: 2>, scalar_prefetch = 0 : i64, scratch_operands = 0 : i64, tpu.core_type = #tpu.core_type<tc>, window_params = [{transform_indices = @transform_0, window_bounds = array<i64: 1, 8, 32>}, {pipeline_mode = #tpu.pipeline_mode<synchronous>, transform_indices = @transform_1, window_bounds = array<i64: 1, 8, 32>}, {pipeline_mode = #tpu.pipeline_mode<synchronous>, transform_indices = @transform_2, window_bounds = array<i64: 2, 12, 8, 32>}, {pipeline_mode = #tpu.pipeline_mode<synchronous>, transform_indices = @transform_3, window_bounds = array<i64: 2, 12, 8>}, {pipeline_mode = #tpu.pipeline_mode<synchronous>, transform_indices = @transform_4, window_bounds = array<i64: 2, 4, 8, 32>}, {pipeline_mode = #tpu.pipeline_mode<synchronous>, transform_indices = @transform_5, window_bounds = array<i64: 2, 32, 128>}, {pipeline_mode = #tpu.pipeline_mode<synchronous>, transform_indices = @transform_6, window_bounds = array<i64: 2, 128, 32>}, {pipeline_mode = #tpu.pipeline_mode<synchronous>, transform_indices = @transform_7, window_bounds = array<i64: 2, 8, 128>}, {transform_indices = @transform_8, window_bounds = array<i64: 1, 8, 32>}]} {
    %c0 = arith.constant 0 : index
    %c0_0 = arith.constant 0 : index
    %c0_1 = arith.constant 0 : index
    %0 = vector.load %arg1[%c0, %c0_0, %c0_1] : memref<1x8x32xf32, #tpu.memory_space<vmem>>, vector<1x8x32xf32>
    %1 = vector.shape_cast %0 : vector<1x8x32xf32> to vector<8x32xf32>
    %c0_2 = arith.constant 0 : index
    %c0_3 = arith.constant 0 : index
    %c0_4 = arith.constant 0 : index
    %2 = vector.load %arg2[%c0_2, %c0_3, %c0_4] : memref<1x8x32xf32, #tpu.memory_space<vmem>>, vector<1x8x32xf32>
    %3 = vector.shape_cast %2 : vector<1x8x32xf32> to vector<8x32xf32>
    %4 = arith.addf %1, %3 : vector<8x32xf32>
    %c0_5 = arith.constant 0 : index
    %c0_6 = arith.constant 0 : index
    %c0_7 = arith.constant 0 : index
    %5 = vector.load %arg8[%c0_5, %c0_6, %c0_7] : memref<2x8x128xf32, #tpu.memory_space<vmem>>, vector<1x8x128xf32>
    %6 = vector.shape_cast %5 : vector<1x8x128xf32> to vector<8x128xf32>
    %7 = vector.extract_strided_slice %6 {offsets = [0, 0], sizes = [1, 32], strides = [1, 1]} : vector<8x128xf32> to vector<1x32xf32>
    %8 = vector.extract_strided_slice %6 {offsets = [1, 0], sizes = [1, 32], strides = [1, 1]} : vector<8x128xf32> to vector<1x32xf32>
    %9 = vector.extract_strided_slice %6 {offsets = [2, 0], sizes = [1, 32], strides = [1, 1]} : vector<8x128xf32> to vector<1x32xf32>
    %10 = vector.extract_strided_slice %6 {offsets = [3, 0], sizes = [1, 128], strides = [1, 1]} : vector<8x128xf32> to vector<1x128xf32>
    %11 = vector.extract_strided_slice %6 {offsets = [4, 0], sizes = [1, 32], strides = [1, 1]} : vector<8x128xf32> to vector<1x32xf32>
    %12 = vector.extract_strided_slice %6 {offsets = [5, 0], sizes = [1, 32], strides = [1, 1]} : vector<8x128xf32> to vector<1x32xf32>
    %13 = vector.extract_strided_slice %6 {offsets = [6, 0], sizes = [1, 32], strides = [1, 1]} : vector<8x128xf32> to vector<1x32xf32>
    %14 = vector.shape_cast %4 : vector<8x32xf32> to vector<1x8x32xf32>
    %15 = vector.broadcast %14 : vector<1x8x32xf32> to vector<12x8x32xf32>
    %c0_8 = arith.constant 0 : index
    %c0_9 = arith.constant 0 : index
    %c0_10 = arith.constant 0 : index
    %c0_11 = arith.constant 0 : index
    %16 = vector.load %arg3[%c0_8, %c0_9, %c0_10, %c0_11] : memref<2x12x8x32xf32, #tpu.memory_space<vmem>>, vector<1x12x8x32xf32>
    %17 = vector.shape_cast %16 : vector<1x12x8x32xf32> to vector<12x8x32xf32>
    "tpu.trace_start"() <{level = 10 : i32, message = "hsd,hed->hse"}> : () -> ()
    %cst = arith.constant dense<0.000000e+00> : vector<12x8x8xf32>
    %18 = tpu.matmul %15, %17, %cst {dimension_numbers = #tpu.dot_dimension_numbers<[2], [2], [1], [1], [0, 0, 0, 1, 1, 1], [0], [0]>} : vector<12x8x32xf32>, vector<12x8x32xf32>, vector<12x8x8xf32> -> vector<12x8x8xf32>
    "tpu.trace_stop"() : () -> ()
    %c0_12 = arith.constant 0 : index
    %c0_13 = arith.constant 0 : index
    %c0_14 = arith.constant 0 : index
    %19 = vector.load %arg4[%c0_12, %c0_13, %c0_14] : memref<2x12x8xf32, #tpu.memory_space<vmem>>, vector<1x12x8xf32>
    %20 = vector.shape_cast %19 : vector<1x12x8xf32> to vector<12x8xf32>
    %21 = vector.shape_cast %20 : vector<12x8xf32> to vector<12x1x8xf32>
    %22 = vector.broadcast %21 : vector<12x1x8xf32> to vector<12x8x8xf32>
    %23 = arith.addf %18, %22 : vector<12x8x8xf32>
    %24 = vector.extract_strided_slice %23 {offsets = [0, 0, 0], sizes = [4, 8, 8], strides = [1, 1, 1]} : vector<12x8x8xf32> to vector<4x8x8xf32>
    %25 = vector.extract_strided_slice %23 {offsets = [4, 0, 0], sizes = [4, 8, 8], strides = [1, 1, 1]} : vector<12x8x8xf32> to vector<4x8x8xf32>
    %26 = vector.extract_strided_slice %23 {offsets = [8, 0, 0], sizes = [4, 8, 8], strides = [1, 1, 1]} : vector<12x8x8xf32> to vector<4x8x8xf32>
    "tpu.trace_start"() <{level = 10 : i32, message = "hqd,hkd->hqk"}> : () -> ()
    %cst_15 = arith.constant dense<0.000000e+00> : vector<4x8x8xf32>
    %27 = tpu.matmul %24, %25, %cst_15 {dimension_numbers = #tpu.dot_dimension_numbers<[2], [2], [1], [1], [0, 0, 0, 1, 1, 1], [0], [0]>} : vector<4x8x8xf32>, vector<4x8x8xf32>, vector<4x8x8xf32> -> vector<4x8x8xf32>
    "tpu.trace_stop"() : () -> ()
    %cst_16 = arith.constant 0.353553385 : f32
    %28 = vector.broadcast %cst_16 : f32 to vector<4x8x8xf32>
    %29 = arith.mulf %27, %28 : vector<4x8x8xf32>
    %cst_17 = arith.constant dense<0xFF800000> : vector<4x8xf32>
    %30 = vector.multi_reduction <maximumf>, %29, %cst_17 [2] : vector<4x8x8xf32> to vector<4x8xf32>
    %31 = vector.shape_cast %30 : vector<4x8xf32> to vector<4x8x1xf32>
    %32 = vector.broadcast %31 : vector<4x8x1xf32> to vector<4x8x8xf32>
    %33 = arith.subf %29, %32 : vector<4x8x8xf32>
    %34 = math.exp %33 : vector<4x8x8xf32>
    %cst_18 = arith.constant dense<0.000000e+00> : vector<4x8xf32>
    %35 = vector.multi_reduction <add>, %34, %cst_18 [2] : vector<4x8x8xf32> to vector<4x8xf32>
    %36 = vector.shape_cast %35 : vector<4x8xf32> to vector<4x8x1xf32>
    %37 = tpu.reciprocal %36 {approx = true} : vector<4x8x1xf32> -> vector<4x8x1xf32>
    %38 = arith.mulf %36, %37 : vector<4x8x1xf32>
    %cst_19 = arith.constant 2.000000e+00 : f32
    %39 = vector.broadcast %cst_19 : f32 to vector<4x8x1xf32>
    %40 = arith.subf %39, %38 : vector<4x8x1xf32>
    %41 = arith.mulf %37, %40 : vector<4x8x1xf32>
    %42 = vector.broadcast %41 : vector<4x8x1xf32> to vector<4x8x8xf32>
    %43 = arith.mulf %34, %42 : vector<4x8x8xf32>
    "tpu.trace_start"() <{level = 10 : i32, message = "hqk,hkd->hqd"}> : () -> ()
    %cst_20 = arith.constant dense<0.000000e+00> : vector<4x8x8xf32>
    %44 = tpu.matmul %43, %26, %cst_20 {dimension_numbers = #tpu.dot_dimension_numbers<[2], [1], [1], [2], [0, 0, 0, 1, 1, 2], [0], [0]>} : vector<4x8x8xf32>, vector<4x8x8xf32>, vector<4x8x8xf32> -> vector<4x8x8xf32>
    "tpu.trace_stop"() : () -> ()
    %c0_21 = arith.constant 0 : index
    %c0_22 = arith.constant 0 : index
    %c0_23 = arith.constant 0 : index
    %c0_24 = arith.constant 0 : index
    %45 = vector.load %arg5[%c0_21, %c0_22, %c0_23, %c0_24] : memref<2x4x8x32xf32, #tpu.memory_space<vmem>>, vector<1x4x8x32xf32>
    %46 = vector.shape_cast %45 : vector<1x4x8x32xf32> to vector<4x8x32xf32>
    "tpu.trace_start"() <{level = 10 : i32, message = "hqd,hde->hqe"}> : () -> ()
    %cst_25 = arith.constant dense<0.000000e+00> : vector<4x8x32xf32>
    %47 = tpu.matmul %44, %46, %cst_25 {dimension_numbers = #tpu.dot_dimension_numbers<[2], [1], [1], [2], [0, 0, 0, 1, 1, 2], [0], [0]>} : vector<4x8x8xf32>, vector<4x8x32xf32>, vector<4x8x32xf32> -> vector<4x8x32xf32>
    "tpu.trace_stop"() : () -> ()
    %cst_26 = arith.constant dense<0.000000e+00> : vector<8x32xf32>
    %48 = vector.multi_reduction <add>, %47, %cst_26 [0] : vector<4x8x32xf32> to vector<8x32xf32>
    %49 = vector.broadcast %7 : vector<1x32xf32> to vector<8x32xf32>
    %50 = arith.addf %48, %49 : vector<8x32xf32>
    %51 = arith.addf %4, %50 : vector<8x32xf32>
    %cst_27 = arith.constant dense<0.000000e+00> : vector<8xf32>
    %52 = vector.multi_reduction <add>, %51, %cst_27 [1] : vector<8x32xf32> to vector<8xf32>
    %53 = vector.shape_cast %52 : vector<8xf32> to vector<8x1xf32>
    %cst_28 = arith.constant 3.125000e-02 : f32
    %54 = vector.broadcast %cst_28 : f32 to vector<8x1xf32>
    %55 = arith.mulf %53, %54 : vector<8x1xf32>
    %56 = vector.broadcast %55 : vector<8x1xf32> to vector<8x32xf32>
    %57 = arith.subf %51, %56 : vector<8x32xf32>
    %58 = arith.mulf %57, %57 : vector<8x32xf32>
    %cst_29 = arith.constant dense<0.000000e+00> : vector<8xf32>
    %59 = vector.multi_reduction <add>, %58, %cst_29 [1] : vector<8x32xf32> to vector<8xf32>
    %60 = vector.shape_cast %59 : vector<8xf32> to vector<8x1xf32>
    %cst_30 = arith.constant 3.125000e-02 : f32
    %61 = vector.broadcast %cst_30 : f32 to vector<8x1xf32>
    %62 = arith.mulf %60, %61 : vector<8x1xf32>
    %cst_31 = arith.constant 9.99999974E-6 : f32
    %63 = vector.broadcast %cst_31 : f32 to vector<8x1xf32>
    %64 = arith.addf %62, %63 : vector<8x1xf32>
    %65 = math.rsqrt %64 : vector<8x1xf32>
    %66 = vector.broadcast %65 : vector<8x1xf32> to vector<8x32xf32>
    %67 = arith.mulf %57, %66 : vector<8x32xf32>
    %68 = vector.broadcast %8 : vector<1x32xf32> to vector<8x32xf32>
    %69 = arith.mulf %67, %68 : vector<8x32xf32>
    %70 = vector.broadcast %9 : vector<1x32xf32> to vector<8x32xf32>
    %71 = arith.addf %69, %70 : vector<8x32xf32>
    %c0_32 = arith.constant 0 : index
    %c0_33 = arith.constant 0 : index
    %c0_34 = arith.constant 0 : index
    %72 = vector.load %arg6[%c0_32, %c0_33, %c0_34] : memref<2x32x128xf32, #tpu.memory_space<vmem>>, vector<1x32x128xf32>
    %73 = vector.shape_cast %72 : vector<1x32x128xf32> to vector<32x128xf32>
    %cst_35 = arith.constant dense<0.000000e+00> : vector<8x128xf32>
    %74 = tpu.matmul %71, %73, %cst_35 {dimension_numbers = #tpu.dot_dimension_numbers<[1], [0], [0], [1], [0, 0, 1, 1], [], []>} : vector<8x32xf32>, vector<32x128xf32>, vector<8x128xf32> -> vector<8x128xf32>
    %75 = vector.broadcast %10 : vector<1x128xf32> to vector<8x128xf32>
    %76 = arith.addf %74, %75 : vector<8x128xf32>
    %cst_36 = arith.constant 0.000000e+00 : f32
    %77 = vector.broadcast %cst_36 : f32 to vector<8x128xf32>
    %78 = arith.maximumf %76, %77 : vector<8x128xf32>
    %c0_37 = arith.constant 0 : index
    %c0_38 = arith.constant 0 : index
    %c0_39 = arith.constant 0 : index
    %79 = vector.load %arg7[%c0_37, %c0_38, %c0_39] : memref<2x128x32xf32, #tpu.memory_space<vmem>>, vector<1x128x32xf32>
    %80 = vector.shape_cast %79 : vector<1x128x32xf32> to vector<128x32xf32>
    %cst_40 = arith.constant dense<0.000000e+00> : vector<8x32xf32>
    %81 = tpu.matmul %78, %80, %cst_40 {dimension_numbers = #tpu.dot_dimension_numbers<[1], [0], [0], [1], [0, 0, 1, 1], [], []>} : vector<8x128xf32>, vector<128x32xf32>, vector<8x32xf32> -> vector<8x32xf32>
    %82 = vector.broadcast %11 : vector<1x32xf32> to vector<8x32xf32>
    %83 = arith.addf %81, %82 : vector<8x32xf32>
    %84 = arith.addf %71, %83 : vector<8x32xf32>
    %cst_41 = arith.constant dense<0.000000e+00> : vector<8xf32>
    %85 = vector.multi_reduction <add>, %84, %cst_41 [1] : vector<8x32xf32> to vector<8xf32>
    %86 = vector.shape_cast %85 : vector<8xf32> to vector<8x1xf32>
    %cst_42 = arith.constant 3.125000e-02 : f32
    %87 = vector.broadcast %cst_42 : f32 to vector<8x1xf32>
    %88 = arith.mulf %86, %87 : vector<8x1xf32>
    %89 = vector.broadcast %88 : vector<8x1xf32> to vector<8x32xf32>
    %90 = arith.subf %84, %89 : vector<8x32xf32>
    %91 = arith.mulf %90, %90 : vector<8x32xf32>
    %cst_43 = arith.constant dense<0.000000e+00> : vector<8xf32>
    %92 = vector.multi_reduction <add>, %91, %cst_43 [1] : vector<8x32xf32> to vector<8xf32>
    %93 = vector.shape_cast %92 : vector<8xf32> to vector<8x1xf32>
    %cst_44 = arith.constant 3.125000e-02 : f32
    %94 = vector.broadcast %cst_44 : f32 to vector<8x1xf32>
    %95 = arith.mulf %93, %94 : vector<8x1xf32>
    %cst_45 = arith.constant 9.99999974E-6 : f32
    %96 = vector.broadcast %cst_45 : f32 to vector<8x1xf32>
    %97 = arith.addf %95, %96 : vector<8x1xf32>
    %98 = math.rsqrt %97 : vector<8x1xf32>
    %99 = vector.broadcast %98 : vector<8x1xf32> to vector<8x32xf32>
    %100 = arith.mulf %90, %99 : vector<8x32xf32>
    %101 = vector.broadcast %12 : vector<1x32xf32> to vector<8x32xf32>
    %102 = arith.mulf %100, %101 : vector<8x32xf32>
    %103 = vector.broadcast %13 : vector<1x32xf32> to vector<8x32xf32>
    %104 = arith.addf %102, %103 : vector<8x32xf32>
    %c1 = arith.constant 1 : index
    %c0_46 = arith.constant 0 : index
    %c0_47 = arith.constant 0 : index
    %105 = vector.load %arg8[%c1, %c0_46, %c0_47] : memref<2x8x128xf32, #tpu.memory_space<vmem>>, vector<1x8x128xf32>
    %106 = vector.shape_cast %105 : vector<1x8x128xf32> to vector<8x128xf32>
    %107 = vector.extract_strided_slice %106 {offsets = [0, 0], sizes = [1, 32], strides = [1, 1]} : vector<8x128xf32> to vector<1x32xf32>
    %108 = vector.extract_strided_slice %106 {offsets = [1, 0], sizes = [1, 32], strides = [1, 1]} : vector<8x128xf32> to vector<1x32xf32>
    %109 = vector.extract_strided_slice %106 {offsets = [2, 0], sizes = [1, 32], strides = [1, 1]} : vector<8x128xf32> to vector<1x32xf32>
    %110 = vector.extract_strided_slice %106 {offsets = [3, 0], sizes = [1, 128], strides = [1, 1]} : vector<8x128xf32> to vector<1x128xf32>
    %111 = vector.extract_strided_slice %106 {offsets = [4, 0], sizes = [1, 32], strides = [1, 1]} : vector<8x128xf32> to vector<1x32xf32>
    %112 = vector.extract_strided_slice %106 {offsets = [5, 0], sizes = [1, 32], strides = [1, 1]} : vector<8x128xf32> to vector<1x32xf32>
    %113 = vector.extract_strided_slice %106 {offsets = [6, 0], sizes = [1, 32], strides = [1, 1]} : vector<8x128xf32> to vector<1x32xf32>
    %114 = vector.shape_cast %104 : vector<8x32xf32> to vector<1x8x32xf32>
    %115 = vector.broadcast %114 : vector<1x8x32xf32> to vector<12x8x32xf32>
    %c1_48 = arith.constant 1 : index
    %c0_49 = arith.constant 0 : index
    %c0_50 = arith.constant 0 : index
    %c0_51 = arith.constant 0 : index
    %116 = vector.load %arg3[%c1_48, %c0_49, %c0_50, %c0_51] : memref<2x12x8x32xf32, #tpu.memory_space<vmem>>, vector<1x12x8x32xf32>
    %117 = vector.shape_cast %116 : vector<1x12x8x32xf32> to vector<12x8x32xf32>
    "tpu.trace_start"() <{level = 10 : i32, message = "hsd,hed->hse"}> : () -> ()
    %cst_52 = arith.constant dense<0.000000e+00> : vector<12x8x8xf32>
    %118 = tpu.matmul %115, %117, %cst_52 {dimension_numbers = #tpu.dot_dimension_numbers<[2], [2], [1], [1], [0, 0, 0, 1, 1, 1], [0], [0]>} : vector<12x8x32xf32>, vector<12x8x32xf32>, vector<12x8x8xf32> -> vector<12x8x8xf32>
    "tpu.trace_stop"() : () -> ()
    %c1_53 = arith.constant 1 : index
    %c0_54 = arith.constant 0 : index
    %c0_55 = arith.constant 0 : index
    %119 = vector.load %arg4[%c1_53, %c0_54, %c0_55] : memref<2x12x8xf32, #tpu.memory_space<vmem>>, vector<1x12x8xf32>
    %120 = vector.shape_cast %119 : vector<1x12x8xf32> to vector<12x8xf32>
    %121 = vector.shape_cast %120 : vector<12x8xf32> to vector<12x1x8xf32>
    %122 = vector.broadcast %121 : vector<12x1x8xf32> to vector<12x8x8xf32>
    %123 = arith.addf %118, %122 : vector<12x8x8xf32>
    %124 = vector.extract_strided_slice %123 {offsets = [0, 0, 0], sizes = [4, 8, 8], strides = [1, 1, 1]} : vector<12x8x8xf32> to vector<4x8x8xf32>
    %125 = vector.extract_strided_slice %123 {offsets = [4, 0, 0], sizes = [4, 8, 8], strides = [1, 1, 1]} : vector<12x8x8xf32> to vector<4x8x8xf32>
    %126 = vector.extract_strided_slice %123 {offsets = [8, 0, 0], sizes = [4, 8, 8], strides = [1, 1, 1]} : vector<12x8x8xf32> to vector<4x8x8xf32>
    "tpu.trace_start"() <{level = 10 : i32, message = "hqd,hkd->hqk"}> : () -> ()
    %cst_56 = arith.constant dense<0.000000e+00> : vector<4x8x8xf32>
    %127 = tpu.matmul %124, %125, %cst_56 {dimension_numbers = #tpu.dot_dimension_numbers<[2], [2], [1], [1], [0, 0, 0, 1, 1, 1], [0], [0]>} : vector<4x8x8xf32>, vector<4x8x8xf32>, vector<4x8x8xf32> -> vector<4x8x8xf32>
    "tpu.trace_stop"() : () -> ()
    %cst_57 = arith.constant 0.353553385 : f32
    %128 = vector.broadcast %cst_57 : f32 to vector<4x8x8xf32>
    %129 = arith.mulf %127, %128 : vector<4x8x8xf32>
    %cst_58 = arith.constant dense<0xFF800000> : vector<4x8xf32>
    %130 = vector.multi_reduction <maximumf>, %129, %cst_58 [2] : vector<4x8x8xf32> to vector<4x8xf32>
    %131 = vector.shape_cast %130 : vector<4x8xf32> to vector<4x8x1xf32>
    %132 = vector.broadcast %131 : vector<4x8x1xf32> to vector<4x8x8xf32>
    %133 = arith.subf %129, %132 : vector<4x8x8xf32>
    %134 = math.exp %133 : vector<4x8x8xf32>
    %cst_59 = arith.constant dense<0.000000e+00> : vector<4x8xf32>
    %135 = vector.multi_reduction <add>, %134, %cst_59 [2] : vector<4x8x8xf32> to vector<4x8xf32>
    %136 = vector.shape_cast %135 : vector<4x8xf32> to vector<4x8x1xf32>
    %137 = tpu.reciprocal %136 {approx = true} : vector<4x8x1xf32> -> vector<4x8x1xf32>
    %138 = arith.mulf %136, %137 : vector<4x8x1xf32>
    %cst_60 = arith.constant 2.000000e+00 : f32
    %139 = vector.broadcast %cst_60 : f32 to vector<4x8x1xf32>
    %140 = arith.subf %139, %138 : vector<4x8x1xf32>
    %141 = arith.mulf %137, %140 : vector<4x8x1xf32>
    %142 = vector.broadcast %141 : vector<4x8x1xf32> to vector<4x8x8xf32>
    %143 = arith.mulf %134, %142 : vector<4x8x8xf32>
    "tpu.trace_start"() <{level = 10 : i32, message = "hqk,hkd->hqd"}> : () -> ()
    %cst_61 = arith.constant dense<0.000000e+00> : vector<4x8x8xf32>
    %144 = tpu.matmul %143, %126, %cst_61 {dimension_numbers = #tpu.dot_dimension_numbers<[2], [1], [1], [2], [0, 0, 0, 1, 1, 2], [0], [0]>} : vector<4x8x8xf32>, vector<4x8x8xf32>, vector<4x8x8xf32> -> vector<4x8x8xf32>
    "tpu.trace_stop"() : () -> ()
    %c1_62 = arith.constant 1 : index
    %c0_63 = arith.constant 0 : index
    %c0_64 = arith.constant 0 : index
    %c0_65 = arith.constant 0 : index
    %145 = vector.load %arg5[%c1_62, %c0_63, %c0_64, %c0_65] : memref<2x4x8x32xf32, #tpu.memory_space<vmem>>, vector<1x4x8x32xf32>
    %146 = vector.shape_cast %145 : vector<1x4x8x32xf32> to vector<4x8x32xf32>
    "tpu.trace_start"() <{level = 10 : i32, message = "hqd,hde->hqe"}> : () -> ()
    %cst_66 = arith.constant dense<0.000000e+00> : vector<4x8x32xf32>
    %147 = tpu.matmul %144, %146, %cst_66 {dimension_numbers = #tpu.dot_dimension_numbers<[2], [1], [1], [2], [0, 0, 0, 1, 1, 2], [0], [0]>} : vector<4x8x8xf32>, vector<4x8x32xf32>, vector<4x8x32xf32> -> vector<4x8x32xf32>
    "tpu.trace_stop"() : () -> ()
    %cst_67 = arith.constant dense<0.000000e+00> : vector<8x32xf32>
    %148 = vector.multi_reduction <add>, %147, %cst_67 [0] : vector<4x8x32xf32> to vector<8x32xf32>
    %149 = vector.broadcast %107 : vector<1x32xf32> to vector<8x32xf32>
    %150 = arith.addf %148, %149 : vector<8x32xf32>
    %151 = arith.addf %104, %150 : vector<8x32xf32>
    %cst_68 = arith.constant dense<0.000000e+00> : vector<8xf32>
    %152 = vector.multi_reduction <add>, %151, %cst_68 [1] : vector<8x32xf32> to vector<8xf32>
    %153 = vector.shape_cast %152 : vector<8xf32> to vector<8x1xf32>
    %cst_69 = arith.constant 3.125000e-02 : f32
    %154 = vector.broadcast %cst_69 : f32 to vector<8x1xf32>
    %155 = arith.mulf %153, %154 : vector<8x1xf32>
    %156 = vector.broadcast %155 : vector<8x1xf32> to vector<8x32xf32>
    %157 = arith.subf %151, %156 : vector<8x32xf32>
    %158 = arith.mulf %157, %157 : vector<8x32xf32>
    %cst_70 = arith.constant dense<0.000000e+00> : vector<8xf32>
    %159 = vector.multi_reduction <add>, %158, %cst_70 [1] : vector<8x32xf32> to vector<8xf32>
    %160 = vector.shape_cast %159 : vector<8xf32> to vector<8x1xf32>
    %cst_71 = arith.constant 3.125000e-02 : f32
    %161 = vector.broadcast %cst_71 : f32 to vector<8x1xf32>
    %162 = arith.mulf %160, %161 : vector<8x1xf32>
    %cst_72 = arith.constant 9.99999974E-6 : f32
    %163 = vector.broadcast %cst_72 : f32 to vector<8x1xf32>
    %164 = arith.addf %162, %163 : vector<8x1xf32>
    %165 = math.rsqrt %164 : vector<8x1xf32>
    %166 = vector.broadcast %165 : vector<8x1xf32> to vector<8x32xf32>
    %167 = arith.mulf %157, %166 : vector<8x32xf32>
    %168 = vector.broadcast %108 : vector<1x32xf32> to vector<8x32xf32>
    %169 = arith.mulf %167, %168 : vector<8x32xf32>
    %170 = vector.broadcast %109 : vector<1x32xf32> to vector<8x32xf32>
    %171 = arith.addf %169, %170 : vector<8x32xf32>
    %c1_73 = arith.constant 1 : index
    %c0_74 = arith.constant 0 : index
    %c0_75 = arith.constant 0 : index
    %172 = vector.load %arg6[%c1_73, %c0_74, %c0_75] : memref<2x32x128xf32, #tpu.memory_space<vmem>>, vector<1x32x128xf32>
    %173 = vector.shape_cast %172 : vector<1x32x128xf32> to vector<32x128xf32>
    %cst_76 = arith.constant dense<0.000000e+00> : vector<8x128xf32>
    %174 = tpu.matmul %171, %173, %cst_76 {dimension_numbers = #tpu.dot_dimension_numbers<[1], [0], [0], [1], [0, 0, 1, 1], [], []>} : vector<8x32xf32>, vector<32x128xf32>, vector<8x128xf32> -> vector<8x128xf32>
    %175 = vector.broadcast %110 : vector<1x128xf32> to vector<8x128xf32>
    %176 = arith.addf %174, %175 : vector<8x128xf32>
    %cst_77 = arith.constant 0.000000e+00 : f32
    %177 = vector.broadcast %cst_77 : f32 to vector<8x128xf32>
    %178 = arith.maximumf %176, %177 : vector<8x128xf32>
    %c1_78 = arith.constant 1 : index
    %c0_79 = arith.constant 0 : index
    %c0_80 = arith.constant 0 : index
    %179 = vector.load %arg7[%c1_78, %c0_79, %c0_80] : memref<2x128x32xf32, #tpu.memory_space<vmem>>, vector<1x128x32xf32>
    %180 = vector.shape_cast %179 : vector<1x128x32xf32> to vector<128x32xf32>
    %cst_81 = arith.constant dense<0.000000e+00> : vector<8x32xf32>
    %181 = tpu.matmul %178, %180, %cst_81 {dimension_numbers = #tpu.dot_dimension_numbers<[1], [0], [0], [1], [0, 0, 1, 1], [], []>} : vector<8x128xf32>, vector<128x32xf32>, vector<8x32xf32> -> vector<8x32xf32>
    %182 = vector.broadcast %111 : vector<1x32xf32> to vector<8x32xf32>
    %183 = arith.addf %181, %182 : vector<8x32xf32>
    %184 = arith.addf %171, %183 : vector<8x32xf32>
    %cst_82 = arith.constant dense<0.000000e+00> : vector<8xf32>
    %185 = vector.multi_reduction <add>, %184, %cst_82 [1] : vector<8x32xf32> to vector<8xf32>
    %186 = vector.shape_cast %185 : vector<8xf32> to vector<8x1xf32>
    %cst_83 = arith.constant 3.125000e-02 : f32
    %187 = vector.broadcast %cst_83 : f32 to vector<8x1xf32>
    %188 = arith.mulf %186, %187 : vector<8x1xf32>
    %189 = vector.broadcast %188 : vector<8x1xf32> to vector<8x32xf32>
    %190 = arith.subf %184, %189 : vector<8x32xf32>
    %191 = arith.mulf %190, %190 : vector<8x32xf32>
    %cst_84 = arith.constant dense<0.000000e+00> : vector<8xf32>
    %192 = vector.multi_reduction <add>, %191, %cst_84 [1] : vector<8x32xf32> to vector<8xf32>
    %193 = vector.shape_cast %192 : vector<8xf32> to vector<8x1xf32>
    %cst_85 = arith.constant 3.125000e-02 : f32
    %194 = vector.broadcast %cst_85 : f32 to vector<8x1xf32>
    %195 = arith.mulf %193, %194 : vector<8x1xf32>
    %cst_86 = arith.constant 9.99999974E-6 : f32
    %196 = vector.broadcast %cst_86 : f32 to vector<8x1xf32>
    %197 = arith.addf %195, %196 : vector<8x1xf32>
    %198 = math.rsqrt %197 : vector<8x1xf32>
    %199 = vector.broadcast %198 : vector<8x1xf32> to vector<8x32xf32>
    %200 = arith.mulf %190, %199 : vector<8x32xf32>
    %201 = vector.broadcast %112 : vector<1x32xf32> to vector<8x32xf32>
    %202 = arith.mulf %200, %201 : vector<8x32xf32>
    %203 = vector.broadcast %113 : vector<1x32xf32> to vector<8x32xf32>
    %204 = arith.addf %202, %203 : vector<8x32xf32>
    %c0_87 = arith.constant 0 : index
    %c0_88 = arith.constant 0 : index
    %c0_89 = arith.constant 0 : index
    %205 = vector.load %arg9[%c0_87, %c0_88, %c0_89] : memref<1x8x32xf32, #tpu.memory_space<vmem>>, vector<1x8x32xf32>
    %206 = vector.shape_cast %205 : vector<1x8x32xf32> to vector<8x32xf32>
    %207 = vector.shape_cast %204 : vector<8x32xf32> to vector<1x8x32xf32>
    tpu.vector_store %arg9[%c0_87, %c0_88, %c0_89], %207 {strides = array<i32>} : memref<1x8x32xf32, #tpu.memory_space<vmem>>, vector<1x8x32xf32>,
    return
  }
  func.func @transform_0(%arg0: i32) -> (i32, i32, i32) {
    %c0_i32 = arith.constant 0 : i32
    %c0_i32_0 = arith.constant 0 : i32
    %c0_i32_1 = arith.constant 0 : i32
    return %arg0, %c0_i32, %c0_i32_0 : i32, i32, i32
  }
  func.func @transform_1(%arg0: i32) -> (i32, i32, i32) {
    %c0_i32 = arith.constant 0 : i32
    %c0_i32_0 = arith.constant 0 : i32
    %c0_i32_1 = arith.constant 0 : i32
    %c0_i32_2 = arith.constant 0 : i32
    return %c0_i32, %c0_i32_0, %c0_i32_1 : i32, i32, i32
  }
  func.func @transform_2(%arg0: i32) -> (i32, i32, i32, i32) {
    %c0_i32 = arith.constant 0 : i32
    %c0_i32_0 = arith.constant 0 : i32
    %c0_i32_1 = arith.constant 0 : i32
    %c0_i32_2 = arith.constant 0 : i32
    %c0_i32_3 = arith.constant 0 : i32
    return %c0_i32, %c0_i32_0, %c0_i32_1, %c0_i32_2 : i32, i32, i32, i32
  }
  func.func @transform_3(%arg0: i32) -> (i32, i32, i32) {
    %c0_i32 = arith.constant 0 : i32
    %c0_i32_0 = arith.constant 0 : i32
    %c0_i32_1 = arith.constant 0 : i32
    %c0_i32_2 = arith.constant 0 : i32
    return %c0_i32, %c0_i32_0, %c0_i32_1 : i32, i32, i32
  }
  func.func @transform_4(%arg0: i32) -> (i32, i32, i32, i32) {
    %c0_i32 = arith.constant 0 : i32
    %c0_i32_0 = arith.constant 0 : i32
    %c0_i32_1 = arith.constant 0 : i32
    %c0_i32_2 = arith.constant 0 : i32
    %c0_i32_3 = arith.constant 0 : i32
    return %c0_i32, %c0_i32_0, %c0_i32_1, %c0_i32_2 : i32, i32, i32, i32
  }
  func.func @transform_5(%arg0: i32) -> (i32, i32, i32) {
    %c0_i32 = arith.constant 0 : i32
    %c0_i32_0 = arith.constant 0 : i32
    %c0_i32_1 = arith.constant 0 : i32
    %c0_i32_2 = arith.constant 0 : i32
    return %c0_i32, %c0_i32_0, %c0_i32_1 : i32, i32, i32
  }
  func.func @transform_6(%arg0: i32) -> (i32, i32, i32) {
    %c0_i32 = arith.constant 0 : i32
    %c0_i32_0 = arith.constant 0 : i32
    %c0_i32_1 = arith.constant 0 : i32
    %c0_i32_2 = arith.constant 0 : i32
    return %c0_i32, %c0_i32_0, %c0_i32_1 : i32, i32, i32
  }
  func.func @transform_7(%arg0: i32) -> (i32, i32, i32) {
    %c0_i32 = arith.constant 0 : i32
    %c0_i32_0 = arith.constant 0 : i32
    %c0_i32_1 = arith.constant 0 : i32
    %c0_i32_2 = arith.constant 0 : i32
    return %c0_i32, %c0_i32_0, %c0_i32_1 : i32, i32, i32
  }
  func.func @transform_8(%arg0: i32) -> (i32, i32, i32) {
    %c0_i32 = arith.constant 0 : i32
    %c0_i32_0 = arith.constant 0 : i32
    %c0_i32_1 = arith.constant 0 : i32
    return %arg0, %c0_i32, %c0_i32_0 : i32, i32, i32
  }
}

</mosaic_0001>

<bundles_post_ra>
// kernel: tpu_custom_call.1
= control target key start
LH: loop header
LB: loop body
LE: loop exit
PB: predicated region body
PF: predicated region fallthrough
CT: control target
= control target key end

     0   :  { %13 = vsyncpa [#allocation3], 0  ;;  %s6778_s0 = inlined_call_operand.hbm [shape: f32[2,8,32], index: 0, kind: input, shape index: {}]   ;;  %s6779_s1 = inlined_call_operand.hbm [shape: f32[1,8,32], index: 1, kind: input, shape index: {}]   ;;  %s6780_s2 = inlined_call_operand.vmem [shape: f32[2,12,8,32], index: 2, kind: input, shape index: {}]   ;;  %s6781_s3 = inlined_call_operand.vmem [shape: f32[2,12,8], index: 3, kind: input, shape index: {}]   ;;  %s6782_s4 = inlined_call_operand.vmem [shape: f32[2,4,8,32], index: 4, kind: input, shape index: {}]   ;;  %s6783_s5 = inlined_call_operand.vmem [shape: f32[2,32,128], index: 5, kind: input, shape index: {}]   ;;  %s6784_s6 = inlined_call_operand.vmem [shape: f32[2,128,32], index: 6, kind: input, shape index: {}]   ;;  %s6785_s7 = inlined_call_operand.hbm [shape: f32[2,8,128], index: 7, kind: input, shape index: {}]   ;;  %s6786_s8 = inlined_call_operand.hbm [shape: f32[2,8,32], index: 8, kind: output, shape index: {}]  }
   0x1   :  { %15 = vsyncpa [#allocation3 + $0x1], 0 }
   0x2   :  { %16 = vsyncpa [#allocation6], 0 }
   0x3   :  { %17 = vsyncpa [#allocation4], 0 }
   0x4   :  { %19 = vsyncpa [#allocation4 + $0x1], 0  ;;  %s5887_s27 = smov 0   ;;  %s5889_s28 = smov 0  }
   0x5   :  { %s5891_s29 = smov 0   ;;  %s5893_s30 = smov 0  }
   0x6 LB: > { %s5908_s9 = sadd.s32 4294967295, %s5830_s30   ;;  %s4889_s10 = sadd.s32 4294967294, %s5830_s30   ;;  %s5830_s30 = sphi %s5893_s30, %s6806_s30   ;;  %s5826_s29 = sphi %s5891_s29, %s6805_s29   ;;  %s5822_s28 = sphi %s5889_s28, %s6804_s28   ;;  %s5818_s27 = sphi %s5887_s27, %s6803_s27  }
   0x7   : > { %p45_p0 = scmp.ne.s32.totalorder %s5822_s28, %s5818_s27  ;;  %p6787_p1 = scmp.eq.s32.totalorder %s5908_s9, 0 }
   0x8   : > { %p222_p3 = scmp.eq.s32.totalorder %s4889_s10, 1  ;;  %p4890_p5 = scmp.ge.s32.totalorder %s5830_s30, 1 }
   0x9   : > { %p5917_p4 = por %p6787_p1, %p45_p0  ;;  %p229_p7 = scmp.lt.s32.totalorder %s5830_s30, 3 }
   0xa   : > { %p5922_p6 = por %p222_p3, %p45_p0  ;;  %s5832_s14 = smov [#allocation5]  }
   0xb   : > { %s6790_s11 = scalar_select %p5917_p4, 1, 0 }
   0xc   : > { %s6791_s12 = scalar_select %p5922_p6, 1, 0 }
   0xd   : > { %p5927_p8 = pnand %p4890_p5, %p229_p7  ;;  %s242_s15 = sshll.u32 %s5832_s14, 4  ;;  %s243_s15 = int_to_ptr.vmem [resolvable:$true] %s242_s15 }
   0xe   : > { %s5833_s16 = smov [#allocation7]   ;;  %s5674_s21 = scalar_lea.hbm %s6779_s1, 128 }
   0xf   : > { %s6792_s13 = scalar_select %p5927_p8, 1, 0 }
  0x10   : > { %p5571_p10 = pneg %p5927_p8  ;;  %s267_s17 = sshll.u32 %s5833_s16, 4  ;;  %s5940_s17 = int_to_ptr.vmem [resolvable:$true] %s267_s17 }
  0x11   : > { %p5675_p12 = scmp.ne.s32.totalorder %s6779_s1, %s5674_s21  ;;  %p5681_p5 = scmp.lt.u32.totalorder %s5674_s21, %s6779_s1 }
  0x12   : > { %p5936_p11 = pnand %p5571_p10, %p6787_p1 }
  0x14   : > { %p5676_p13 = pneg %p5936_p11 }
  0x16   : > { %p5677_p0 = pnand %p5676_p13, %p5675_p12 }
  0x18   : > { %p5678_p3 = pneg %p5677_p0 }
  0x1a   : > { %p5683_p7 = pnand %p5681_p5, %p5678_p3 }
  0x1c   : > { %5686 = shalt.err (!%p5683_p7)
}
  0x1d   : > { %s5687_s26 = scalar_lea.vmem %s243_s15, 128  ;;  %p5695_p2 = scmp.lt.s32.totalorder %s243_s15, %s243_s15 }
  0x1e   : > { %p5688_p10 = scmp.ne.s32.totalorder %s243_s15, %s5687_s26  ;;  %p5696_p6 = scmp.lt.s32.totalorder %s5687_s26, %s5687_s26 }
  0x20   : > { %p5690_p9 = pnand %p5688_p10, %p5676_p13  ;;  %p5697_p4 = por %p5696_p6, %p5695_p2 }
  0x22   : > { %p5691_p1 = pneg %p5690_p9 }
  0x24   : > { %p5698_p8 = pnand %p5697_p4, %p5691_p1 }
  0x26   : > { %5701 = shalt.err (!%p5698_p8)
}
  0x27   : > { %5574 = dma.hbm_to_vmem [thread:$0]  (!%p5936_p11), %s6779_s1, 128, %s243_s15, [#allocation6]  }
  0x28   : > { %s5702_s20 = scalar_lea.hbm %s6785_s7, 256 }
  0x29   : > { %p5703_p9 = scmp.ne.s32.totalorder %s6785_s7, %s5702_s20  ;;  %p5709_p4 = scmp.lt.u32.totalorder %s5702_s20, %s6785_s7 }
  0x2b   : > { %p5705_p2 = pnand %p5703_p9, %p5676_p13 }
  0x2d   : > { %p5706_p1 = pneg %p5705_p2 }
  0x2f   : > { %p5711_p6 = pnand %p5709_p4, %p5706_p1 }
  0x31   : > { %5714 = shalt.err (!%p5711_p6)
}
  0x32   : > { %s5715_s15 = scalar_lea.vmem %s5940_s17, 256  ;;  %p5723_p3 = scmp.lt.s32.totalorder %s5940_s17, %s5940_s17 }
  0x33   : > { %p5716_p8 = scmp.ne.s32.totalorder %s5940_s17, %s5715_s15  ;;  %p5724_p5 = scmp.lt.s32.totalorder %s5715_s15, %s5715_s15 }
  0x35   : > { %p5718_p12 = pnand %p5716_p8, %p5676_p13  ;;  %p5725_p7 = por %p5724_p5, %p5723_p3 }
  0x37   : > { %p5719_p0 = pneg %p5718_p12 }
  0x39   : > { %p5726_p10 = pnand %p5725_p7, %p5719_p0 }
  0x3b   : > { %5729 = shalt.err (!%p5726_p10)
}
  0x3c   : > { %s5834_s25 = smov 128   ;;  %s5835_s26 = smov 8  }
  0x3d   : > { %5577 = dma.hbm_to_vmem [thread:$0]  (!%p5936_p11), %s6785_s7, 256, %s5940_s17, [#allocation6], %s5834_s25, %s5834_s25, %s5835_s26  }
  0x3e   : > { %s5990_s16 = sadd.s32 1, %s5830_s30   ;;  %s32_s19 = sadd.s32 1, %s5826_s29 }
  0x3f   : > { %s29_s20 = ssub.s32 %s5830_s30, %s5990_s16  ;;  %p39_p13 = scmp.ne.s32.totalorder %s5826_s29, %s5822_s28 }
  0x40   : > { %p30_p9 = scmp.eq.s32.totalorder %s29_s20, 0  ;;  %p40_p2 = scmp.eq.s32.totalorder %s5830_s30, 0 }
  0x41   : > { %p6794_p1 = scmp.eq.s32.totalorder %s5908_s9, 1  ;;  %p5588_p6 = scmp.lt.s32.totalorder %s5830_s30, 2 }
  0x42   : > { %s6006_s22 = scalar_select %p30_p9, %s5826_s29, %s32_s19  }
  0x43   : > { %p6000_p4 = por %p6794_p1, %p39_p13  ;;  %p41_p8 = por %p40_p2, %p39_p13 }
  0x44   : > { %s281_s18 = sand.u32 1, %s5826_s29   ;;  %s4895_s17 = sshll.u32 %s5830_s30, 7 }
  0x45   : > { %s4894_s23 = sshll.u32 %s281_s18, 3  ;;  %s6013_s25 = scalar_lea.hbm %s6778_s0, %s4895_s17 }
  0x46   : > { %s285_s26 = scalar_lea.vmem [#allocation2], %s4894_s23  ;;  %p6017_p11 = pnand %p5588_p6, %p41_p8 }
  0x47   : > { %s292_s10 = sshll.u32 %s285_s26, 4  ;;  %s282_s19 = scalar_lea.sflag [#allocation3], %s281_s18  ;;  %s6015_s10 = int_to_ptr.vmem [resolvable:$true] %s292_s10 }
  0x48   : > { %s5730_s20 = scalar_lea.hbm %s6013_s25, 128  ;;  %p5732_p0 = pneg %p6017_p11 }
  0x49   : > { %p5731_p12 = scmp.ne.s32.totalorder %s6013_s25, %s5730_s20  ;;  %s5735_s24 = scalar_lea.hbm %s6778_s0, 256 }
  0x4a   : > { %p5736_p7 = scmp.lt.u32.totalorder %s6013_s25, %s6778_s0  ;;  %p5737_p10 = scmp.lt.u32.totalorder %s5735_s24, %s5730_s20 }
  0x4b   : > { %p5733_p3 = pnand %p5732_p0, %p5731_p12  ;;  %p5739_p9 = scmp.lt.u32.totalorder %s5730_s20, %s6013_s25 }
  0x4c   : > { %p5738_p13 = por %p5737_p10, %p5736_p7 }
  0x4d   : > { %p5734_p5 = pneg %p5733_p3 }
  0x4e   : > { %p5740_p2 = por %p5739_p9, %p5738_p13 }
  0x50   : > { %p5741_p1 = pnand %p5740_p2, %p5734_p5 }
  0x52   : > { %5744 = shalt.err (!%p5741_p1)
}
  0x53   : > { %s5745_s18 = scalar_lea.vmem %s6015_s10, 128  ;;  %s5836_s17 = smov [#allocation2]  }
  0x54   : > { %p5746_p6 = scmp.ne.s32.totalorder %s6015_s10, %s5745_s18  ;;  %s5750_s23 = sshll.u32 %s5836_s17, 4  ;;  %s5751_s23 = int_to_ptr.vmem [resolvable:$false] %s5750_s23 }
  0x55   : > { %s5752_s15 = scalar_lea.vmem %s5751_s23, 256  ;;  %p5753_p3 = scmp.lt.s32.totalorder %s6015_s10, %s5751_s23 }
  0x56   : > { %p5748_p8 = pnand %p5746_p6, %p5732_p0  ;;  %p5754_p7 = scmp.lt.s32.totalorder %s5752_s15, %s5745_s18 }
  0x58   : > { %p5749_p12 = pneg %p5748_p8  ;;  %p5755_p10 = por %p5754_p7, %p5753_p3 }
  0x5a   : > { %p5756_p13 = pnand %p5755_p10, %p5749_p12 }
  0x5c   : > { %5759 = shalt.err (!%p5756_p13)
}
  0x5d   : > { %5581 = dma.hbm_to_vmem [thread:$0]  (!%p6017_p11), %s6013_s25, 128, %s6015_s10, %s282_s19  }
  0x5e   : > { %p6797_p5 = scmp.ne.s32.totalorder %s6792_s13, 0 }
  0x5f   : > { %s6049_s20 = sand.u32 (!%p6797_p5), 1, %s5822_s28   ;;  %p6798_p0 = scmp.ne.s32.totalorder (!%p6797_p5), %s6790_s11, 0 }
  0x60   : > { %301 = sbr.rel (%p6797_p5) target bundleno = 4662 (0x1236), region = 52  ;;  %s4897_s24 = sshll.u32 (!%p6797_p5), %s6049_s20, 3 }
  0x61   : > { %s304_s26 = scalar_lea.sflag (!%p6797_p5), [#allocation3], %s6049_s20  ;;  %s307_s18 = scalar_lea.vmem (!%p6797_p5), [#allocation2], %s4897_s24 }
  0x67   : > { %5805 = dma.done.wait (%p6798_p0), %s304_s26, 128  }
  0x68   : > { %5807 = vsyncadd (%p6798_p0), %s304_s26, 4294967168  ;;  %p6799_p11 = scmp.eq.s32.totalorder %s5908_s9, 0 }
  0x6a   : > { %5809 = dma.done.wait (%p6799_p11), [#allocation6], 384   ;;  %p6800_p9 = pmov %p6799_p11 }
  0x6b   : > { %v5837_v0 = vmov 0.0   ;;  %vm5838_vm0 = vmmov 0   ;;  %vm501_vm1 = vcmask 261120   ;;  %v352_v1 = vld [vmem:[%s6780_s2] sm:$0xff]  ;;  %v349_v3 = vld [vmem:[#allocation5] sm:$0xff]  ;;  %v353_v5 = vld [vmem:[%s6780_s2 + $0x8] sm:$0xff]  ;;  %v372_v18 = vlaneseq }
  0x6c   : > { %5811 = vsyncadd (%p6800_p9), [#allocation6], 4294966912  ;;  %5167 = vmatprep.subr.mxu0 %v5837_v0  ;;  %5169 = vmatprep.mubr.msk.f32.mxu0 %vm5838_vm0, %v5837_v0  ;;  %v348_v2 = vld [vmem:[%s307_s18] sm:$0xff]  ;;  %v359_v6 = vld [vmem:[%s6780_s2 + $0x38] sm:$0xff]  ;;  %v5839_v16 = vmov 1966171168  }
  0x6d   : > { %5202 = vmatprep.subr.mxu1 %v5837_v0  ;;  %5204 = vmatprep.mubr.msk.f32.mxu1 %vm5838_vm0, %v5837_v0  ;;  %v6073_v4 = vadd.f32 %v349_v3, %v348_v2  ;;  %v354_v7 = vld [vmem:[%s6780_s2 + $0x10] sm:$0xff]  ;;  %v355_v8 = vld [vmem:[%s6780_s2 + $0x18] sm:$0xff]  ;;  %v356_v9 = vld [vmem:[%s6780_s2 + $0x20] sm:$0xff]  ;;  %v370_v17 = vunpack.c.l.s4 %v5839_v16  ;;  %v6179_v20 = vshrl.u32 %v372_v18, 7  ;;  %vm1381_vm2 = vcmask 64512   ;;  %s5024_s26 = sshll.u32 %s5908_s9, 7 }
  0x6e   : > { %5168 = vmatpush3.xpose.msk.msra.mxu0 %vm501_vm1, %v352_v1  ;;  %5203 = vmatpush3.xpose.msk.msra.mxu1 %vm501_vm1, %v359_v6  ;;  %v357_v10 = vld [vmem:[%s6780_s2 + $0x28] sm:$0xff]  ;;  %v358_v11 = vld [vmem:[%s6780_s2 + $0x30] sm:$0xff]  ;;  %v360_v12 = vld [vmem:[%s6780_s2 + $0x40] sm:$0xff]  ;;  %s347_s18 = scalar_lea.vmem [#allocation8], %s4897_s24  ;;  %s6733_s10 = scalar_lea.hbm %s6786_s8, %s5024_s26 }
  0x6f   : > { %5172 = vmatprep.subr.mxu0 %v5837_v0  ;;  %5212 = vmatprep.subr.mxu1 %v5837_v0  ;;  %v361_v13 = vld [vmem:[%s6780_s2 + $0x48] sm:$0xff]  ;;  %v362_v14 = vld [vmem:[%s6780_s2 + $0x50] sm:$0xff]  ;;  %v363_v15 = vld [vmem:[%s6780_s2 + $0x58] sm:$0xff]  ;;  %v371_v19 = vunpack.c.0.s8 %v370_v17  ;;  %v6191_v36 = vsub.s32 0, %v6179_v20  ;;  %s4800_s11 = sshll.u32 %s347_s18, 4  ;;  %s4787_s14 = scalar_lea.sflag [#allocation4], %s6049_s20  ;;  %s6735_s11 = int_to_ptr.vmem [resolvable:$true] %s4800_s11 }
  0x70   : > { %v364_v21 = vld [vmem:[%s6781_s3] sm:$0xff]  ;;  %s5760_s19 = scalar_lea.vmem %s6735_s11, 128  ;;  %s5841_s9 = smov [#allocation8]  }
  0x71   : > { %5170 = vmatmul.mubr.msk.f32.vlgmr.msra.gmra.mrb[0].mxu0 %vm501_vm1, %v6073_v4  ;;  %5205 = vmatmul.mubr.msk.f32.vlgmr.msra.gmra.mrb[0].mxu1 %vm501_vm1, %v6073_v4  ;;  %v368_v24 = vcombine.high %v364_v21, %v364_v21  ;;  %v6185_v25 = vsub.s32 %v371_v19, %v6179_v20  ;;  %p5761_p2 = scmp.ne.s32.totalorder %s6735_s11, %s5760_s19  ;;  %s5764_s24 = sshll.u32 %s5841_s9, 4  ;;  %s5765_s24 = int_to_ptr.vmem [resolvable:$false] %s5764_s24 }
  0x72   : > { %5173 = vmatpush3.xpose.msk.msra.mxu0 %vm501_vm1, %v353_v5  ;;  %5174 = vmatprep.mubr.msk.f32.mxu0 %vm5838_vm0, %v5837_v0  ;;  %s5766_s17 = scalar_lea.vmem %s5765_s24, 256  ;;  %p5767_p8 = scmp.lt.s32.totalorder %s6735_s11, %s5765_s24 }
  0x73   : > { %5177 = vmatprep.subr.mxu0 %v5837_v0  ;;  %5214 = vmatprep.mubr.msk.f32.mxu1 %vm5838_vm0, %v5837_v0  ;;  %v382_v30 = vrot.slane %v368_v24, %v6185_v25  ;;  %v375_v31 = vrot.slane %v364_v21, %v6185_v25  ;;  %p5762_p1 = pnand %p5761_p2, %p6000_p4  ;;  %p5768_p12 = scmp.lt.s32.totalorder %s5766_s17, %s5760_s19 }
  0x74   : > { %5213 = vmatpush3.xpose.msk.msra.mxu1 %vm501_vm1, %v361_v13 }
  0x75   : > { %5175 = vmatmul.mubr.msk.f32.vlgmr.msra.gmra.mrb[2].mxu0 %vm501_vm1, %v6073_v4  ;;  %5222 = vmatprep.subr.mxu1 %v5837_v0  ;;  %v398_v34 = vrot.slane %v382_v30, %v6185_v25  ;;  %v384_v35 = vcombine.high %v382_v30, %v382_v30  ;;  %v391_v37 = vrot.slane %v375_v31, %v6185_v25  ;;  %p5763_p6 = pneg %p5762_p1  ;;  %p5769_p3 = por %p5768_p12, %p5767_p8 }
  0x76   : > { %5178 = vmatpush3.xpose.msk.msra.mxu0 %vm501_vm1, %v354_v7  ;;  %5179 = vmatprep.mubr.msk.f32.mxu0 %vm5838_vm0, %v5837_v0  ;;  %v383_v38 = vcombine.high %v375_v31, %v375_v31  ;;  %v4901_v7 = vld.sshfl [vmem:[%s6781_s3 + $0x8] sm:$0x33 pattern:$0x75316420] }
  0x77   : > { %5182 = vmatprep.subr.mxu0 %v5837_v0  ;;  %5215 = vmatmul.mubr.msk.f32.vlgmr.msra.gmra.mrb[2].mxu1 %vm501_vm1, %v6073_v4  ;;  %v460_v41 = vrot.slane %v398_v34, %v6191_v36  ;;  %v412_v42 = vrot.slane %v384_v35, %v6185_v25  ;;  %v444_v44 = vrot.slane %v391_v37, %v6191_v36  ;;  %p5770_p7 = pnand %p5769_p3, %p5763_p6 }
  0x78   : > { %5223 = vmatpush3.xpose.msk.msra.mxu1 %vm501_vm1, %v363_v15  ;;  %5224 = vmatprep.mubr.msk.f32.mxu1 %vm5838_vm0, %v5837_v0  ;;  %v405_v45 = vrot.slane %v383_v38, %v6185_v25  ;;  %v414_v50 = vcombine.high %v398_v34, %v398_v34  ;;  %v413_v54 = vcombine.high %v391_v37, %v391_v37 }
  0x79   : > { %5180 = vmatmul.mubr.msk.f32.vlgmr.msra.gmra.mrb[4].mxu0 %vm501_vm1, %v6073_v4  ;;  %5232 = vmatprep.subr.mxu1 %v5837_v0  ;;  %v416_v43 = vcombine.high %v412_v42, %v412_v42  ;;  %v464_v49 = vrot.slane %v412_v42, %v6191_v36 }
  0x7a   : > { %5183 = vmatpush3.xpose.msk.msra.mxu0 %vm501_vm1, %v355_v8  ;;  %5184 = vmatprep.mubr.msk.f32.mxu0 %vm5838_vm0, %v5837_v0  ;;  %v448_v53 = vrot.slane %v405_v45, %v6191_v36  ;;  %v415_v55 = vcombine.high %v405_v45, %v405_v45  ;;  %v468_v59 = vrot.slane %v414_v50, %v6191_v36 }
  0x7b   : > { %5187 = vmatprep.subr.mxu0 %v5837_v0  ;;  %5225 = vmatmul.mubr.msk.f32.vlgmr.msra.gmra.mrb[4].mxu1 %vm501_vm1, %v6073_v4  ;;  %v472_v51 = vrot.slane %v416_v43, %v6191_v36  ;;  %v452_v62 = vrot.slane %v413_v54, %v6191_v36  ;;  %v431_v8 = vrot.slane %v4901_v7, %v6185_v25 }
  0x7c   : > { %5234 = vmatprep.mubr.msk.f32.mxu1 %vm5838_vm0, %v5837_v0  ;;  %v456_v63 = vrot.slane %v415_v55, %v6191_v36 }
  0x7d   : > { %5185 = vmatmul.mubr.msk.f32.vlgmr.msra.gmra.mrb[6].mxu0 %vm501_vm1, %v6073_v4 }
  0x7e   : > { %5188 = vmatpush3.xpose.msk.msra.mxu0 %vm501_vm1, %v356_v9  ;;  %5189 = vmatprep.mubr.msk.f32.mxu0 %vm5838_vm0, %v5837_v0  ;;  %v424_v9 = vcombine.high %v4901_v7, %v4901_v7 }
  0x7f   : > { %5192 = vmatprep.subr.mxu0 %v5837_v0 }
  0x81   : > { %5190 = vmatmul.mubr.msk.f32.vlgmr.msra.gmra.mrb[8].mxu0 %vm501_vm1, %v6073_v4 }
  0x82   : > { %5193 = vmatpush3.xpose.msk.msra.mxu0 %vm501_vm1, %v357_v10  ;;  %5194 = vmatprep.mubr.msk.f32.mxu0 %vm5838_vm0, %v5837_v0  ;;  %v476_v10 = vrot.slane %v431_v8, %v6191_v36 }
  0x83   : > { %5197 = vmatprep.subr.mxu0 %v5837_v0 }
  0x85   : > { %5195 = vmatmul.mubr.msk.f32.vlgmr.msra.gmra.mrb[10].mxu0 %vm501_vm1, %v6073_v4 }
  0x86   : > { %5198 = vmatpush3.xpose.msk.msra.mxu0 %vm501_vm1, %v358_v11  ;;  %5199 = vmatprep.mubr.msk.f32.mxu0 %vm5838_vm0, %v5837_v0  ;;  %v439_v11 = vcombine.high %v431_v8, %v431_v8 }
  0x87   : > { %5207 = vmatprep.subr.mxu0 %v5837_v0 }
  0x88   : > { %v484_v16 = vrot.slane %v439_v11, %v6191_v36 }
  0x89   : > { %5200 = vmatmul.mubr.msk.f32.vlgmr.msra.gmra.mrb[12].mxu0 %vm501_vm1, %v6073_v4 }
  0x8a   : > { %5209 = vmatprep.mubr.msk.f32.mxu0 %vm5838_vm0, %v5837_v0  ;;  %5208 = vmatpush3.xpose.msk.msra.mxu0 %vm501_vm1, %v360_v12  ;;  %v6230_v12 = vrot.slane %v424_v9, %v6185_v25 }
  0x8b   : > { %5217 = vmatprep.subr.mxu0 %v5837_v0 }
  0x8c   : > { %v480_v17 = vrot.slane %v6230_v12, %v6191_v36  ;;  %v440_v11 = vcombine.high %v6230_v12, %v6230_v12 }
  0x8d   : > { %5210 = vmatmul.mubr.msk.f32.vlgmr.msra.gmra.mrb[14].mxu0 %vm501_vm1, %v6073_v4 }
  0x8e   : > { %5218 = vmatpush3.xpose.msk.msra.mxu0 %vm501_vm1, %v362_v14  ;;  %5219 = vmatprep.mubr.msk.f32.mxu0 %vm5838_vm0, %v5837_v0 }
  0x8f   : > { %5227 = vmatprep.subr.mxu0 %v5837_v0 }
  0x91   : > { %5220 = vmatmul.mubr.msk.f32.vlgmr.msra.gmra.mrb[16].mxu0 %vm501_vm1, %v6073_v4 }
  0x92   : > { %5229 = vmatprep.mubr.msk.f32.mxu0 %vm5838_vm0, %v5837_v0 }
 0x144   : > { %v574_v22 = vpop.f32.mrb[0].mxu0  ;;  %v1085_v26 = vpop.f32.mrb[0].mxu1 }
 0x145   : > { %v5171_v23 = vpop.f32.mrb[1].mxu0  ;;  %v5206_v28 = vpop.f32.mrb[1].mxu1  ;;  %v575_v52 = vadd.f32 %v574_v22, %v444_v44  ;;  %v1086_v60 = vadd.f32 %v1085_v26, %v472_v51 }
 0x148   : > { %v647_v27 = vpop.f32.mrb[2].mxu0 }
 0x149   : > { %v5176_v29 = vpop.f32.mrb[3].mxu0  ;;  %v648_v61 = vadd.f32 %v647_v27, %v448_v53 }
 0x14a   : > { %v1231_v19 = vpop.f32.mrb[2].mxu1 }
 0x14b   : > { %v1232_v22 = vadd.f32 %v1231_v19, %v480_v17  ;;  %v5216_v24 = vpop.f32.mrb[3].mxu1 }
 0x14c   : > { %v720_v32 = vpop.f32.mrb[4].mxu0 }
 0x14d   : > { %v5181_v33 = vpop.f32.mrb[5].mxu0  ;;  %v721_v5 = vadd.f32 %v720_v32, %v452_v62 }
 0x14e   : > { %v6239_v26 = vpop.f32.mrb[4].mxu1 }
 0x14f   : > { %v5226_v27 = vpop.f32.mrb[5].mxu1 }
 0x150   : > { %v793_v39 = vpop.f32.mrb[6].mxu0 }
 0x151   : > { %v5186_v40 = vpop.f32.mrb[7].mxu0  ;;  %v794_v6 = vadd.f32 %v793_v39, %v456_v63 }
 0x154   : > { %v866_v46 = vpop.f32.mrb[8].mxu0 }
 0x155   : > { %v867_v47 = vadd.f32 %v866_v46, %v460_v41  ;;  %v5191_v48 = vpop.f32.mrb[9].mxu0 }
 0x157   : > { %5228 = vmatpush3.xpose.msk.msra.mxu0 %vm1381_vm2, %v867_v47 }
 0x158   : > { %v939_v56 = vpop.f32.mrb[10].mxu0  ;;  %5237 = vmatprep.subr.mxu0 %v5837_v0 }
 0x159   : > { %v940_v57 = vadd.f32 %v939_v56, %v464_v49  ;;  %v5196_v58 = vpop.f32.mrb[11].mxu0 }
 0x15a   : > { %5230 = vmatmul.mubr.msk.f32.vlgmr.msra.gmra.mrb[18].mxu0 %vm1381_vm2, %v575_v52 }
 0x15b   : > { %5233 = vmatpush3.xpose.msk.msra.mxu1 %vm1381_vm2, %v940_v57  ;;  %5239 = vmatprep.mubr.msk.f32.mxu0 %vm5838_vm0, %v5837_v0 }
 0x15c   : > { %v1012_v1 = vpop.f32.mrb[12].mxu0  ;;  %5242 = vmatprep.subr.mxu1 %v5837_v0 }
 0x15d   : > { %v1013_v2 = vadd.f32 %v1012_v1, %v468_v59  ;;  %v5201_v3 = vpop.f32.mrb[13].mxu0 }
 0x15e   : > { %5235 = vmatmul.mubr.msk.f32.vlgmr.msra.gmra.mrb[6].mxu1 %vm1381_vm2, %v648_v61 }
 0x15f   : > { %5238 = vmatpush3.xpose.msk.msra.mxu0 %vm1381_vm2, %v1013_v2  ;;  %5243 = vmatpush3.xpose.msk.msra.mxu1 %vm1381_vm2, %v1086_v60 }
 0x160   : > { %5244 = vmatprep.mubr.msk.f32.mxu1 %vm5838_vm0, %v5837_v0  ;;  %5247 = vmatprep.subr.mxu0 %v5837_v0  ;;  %v1158_v13 = vpop.f32.mrb[14].mxu0 }
 0x161   : > { %5252 = vmatprep.subr.mxu1 %v5837_v0  ;;  %v1159_v14 = vadd.f32 %v1158_v13, %v476_v10  ;;  %v5211_v15 = vpop.f32.mrb[15].mxu0 }
 0x162   : > { %5240 = vmatmul.mubr.msk.f32.vlgmr.msra.gmra.mrb[20].mxu0 %vm1381_vm2, %v721_v5  ;;  %5245 = vmatmul.mubr.msk.f32.vlgmr.msra.gmra.mrb[8].mxu1 %vm1381_vm2, %v794_v6 }
 0x163   : > { %5249 = vmatprep.mubr.msk.f32.mxu0 %vm5838_vm0, %v5837_v0  ;;  %5254 = vmatprep.mubr.msk.f32.mxu1 %vm5838_vm0, %v5837_v0 }
 0x164   : > { %5248 = vmatpush3.msra.mxu0 %v1159_v14  ;;  %v1304_v18 = vpop.f32.mrb[16].mxu0  ;;  %5253 = vmatpush3.msra.mxu1 %v1232_v22 }
 0x165   : > { %5257 = vmatprep.subr.mxu0 %v5837_v0  ;;  %v6236_v21 = vadd.f32 %v1304_v18, %v484_v16  ;;  %v5221_v23 = vpop.f32.mrb[17].mxu0  ;;  %5262 = vmatprep.subr.mxu1 %v5837_v0  ;;  %v488_v18 = vrot.slane %v440_v11, %v6191_v36  ;;  %v2372_v11 = vld [vmem:[%s6783_s5 + $0x10] sm:$0xff] }
 0x167   : > { %v1378_v27 = vadd.f32 %v6239_v26, %v488_v18  ;;  %v2038_v26 = vld [vmem:[%s6782_s4] sm:$0xff] }
 0x22d   : > { %v1454_v28 = vpop.f32.mrb[18].mxu0 }
 0x22e   : > { %v1686_v29 = vmul.f32 0.35355338, %v1454_v28  ;;  %v5231_v30 = vpop.f32.mrb[19].mxu0 }
 0x230   : > { %v1690_v31 = vsel %vm1381_vm2, %v1686_v29, -inf }
 0x231   : > { %v1530_v32 = vpop.f32.mrb[6].mxu1  ;;  %1691 = vmax.xlane.f32.xlu0 %v1690_v31 }
 0x232   : > { %v1687_v33 = vmul.f32 0.35355338, %v1530_v32  ;;  %v5236_v34 = vpop.f32.mrb[7].mxu1 }
 0x233   : > { %v2040_v34 = vld [vmem:[%s6782_s4 + $0x10] sm:$0xff] }
 0x234   : > { %v1693_v35 = vsel %vm1381_vm2, %v1687_v33, -inf }
 0x235   : > { %v1682_v37 = vpop.f32.mrb[8].mxu1  ;;  %1694 = vmax.xlane.f32.xlu0 %v1693_v35  ;;  %v1606_v38 = vpop.f32.mrb[20].mxu0 }
 0x236   : > { %v1688_v39 = vmul.f32 0.35355338, %v1606_v38  ;;  %v5241_v40 = vpop.f32.mrb[21].mxu0  ;;  %v5246_v41 = vpop.f32.mrb[9].mxu1  ;;  %v1689_v42 = vmul.f32 0.35355338, %v1682_v37 }
 0x237   : > { %v2041_v38 = vld [vmem:[%s6782_s4 + $0x18] sm:$0xff] }
 0x238   : > { %v1696_v43 = vsel %vm1381_vm2, %v1688_v39, -inf  ;;  %v1699_v44 = vsel %vm1381_vm2, %v1689_v42, -inf }
 0x239   : > { %1697 = vmax.xlane.f32.xlu1 %v1696_v43 }
 0x23d   : > { %1700 = vmax.xlane.f32.xlu1 %v1699_v44 }
 0x2be   : > { %v1692_v45 = vpop.xlane.xlu0 %1691 }
 0x2bf   : > { %v1702_v46 = vsub.f32 %v1686_v29, %v1692_v45 }
 0x2c1   : > { %v1706_v47 = vmul.f32 1.442695, %v1702_v46 }
 0x2c2   : > { %v1695_v48 = vpop.xlane.xlu0 %1694 }
 0x2c3   : > { %5634 = vpow2.f32 %v1706_v47  ;;  %v1703_v49 = vsub.f32 %v1687_v33, %v1695_v48  ;;  %v2039_v33 = vld [vmem:[%s6782_s4 + $0x8] sm:$0xff] }
 0x2c5   : > { %v1708_v50 = vmul.f32 1.442695, %v1703_v49 }
 0x2c6   : > { %v1698_v51 = vpop.xlane.xlu1 %1697 }
 0x2c7   : > { %5636 = vpow2.f32 %v1708_v50  ;;  %v1704_v52 = vsub.f32 %v1688_v39, %v1698_v51 }
 0x2c9   : > { %v1710_v53 = vmul.f32 1.442695, %v1704_v52 }
 0x2ca   : > { %v1701_v54 = vpop.xlane.xlu1 %1700 }
 0x2cb   : > { %5638 = vpow2.f32 %v1710_v53  ;;  %v1705_v55 = vsub.f32 %v1689_v42, %v1701_v54 }
 0x2cd   : > { %v5635_v56 = vpop.eup %5634  ;;  %v1712_v57 = vmul.f32 1.442695, %v1705_v55  ;;  %v6297_v55 = vld [vmem:[#allocation7] sm:$0xff] }
 0x2ce   : > { %v1714_v58 = vsel %vm1381_vm2, %v5635_v56, 0.0 }
 0x2cf   : > { %5640 = vpow2.f32 %v1712_v57  ;;  %1715 = vadd.xlane.f32.xlu0 %v1714_v58  ;;  %v2344_v58 = vrot.slane %v6297_v55, %v6191_v36 }
 0x2d1   : > { %v5637_v59 = vpop.eup %5636 }
 0x2d2   : > { %v1717_v60 = vsel %vm1381_vm2, %v5637_v59, 0.0 }
 0x2d3   : > { %1718 = vadd.xlane.f32.xlu1 %v1717_v60 }
 0x2d5   : > { %v5639_v61 = vpop.eup %5638 }
 0x2d6   : > { %v1720_v62 = vsel %vm1381_vm2, %v5639_v61, 0.0 }
 0x2d7   : > { %1721 = vadd.xlane.f32.xlu0 %v1720_v62 }
 0x2d9   : > { %v5641_v63 = vpop.eup %5640 }
 0x2da   : > { %v1723_v1 = vsel %vm1381_vm2, %v5641_v63, 0.0 }
 0x2db   : > { %1724 = vadd.xlane.f32.xlu1 %v1723_v1 }
 0x35c   : > { %v1716_v2 = vpop.xlane.xlu0 %1715 }
 0x35d   : > { %5642 = vrcp.f32 %v1716_v2 }
 0x360   : > { %v1719_v3 = vpop.xlane.xlu1 %1718 }
 0x361   : > { %5644 = vrcp.f32 %v1719_v3 }
 0x364   : > { %v1722_v5 = vpop.xlane.xlu0 %1721 }
 0x365   : > { %5646 = vrcp.f32 %v1722_v5 }
 0x367   : > { %v5643_v6 = vpop.eup %5642 }
 0x368   : > { %v1730_v7 = vmul.f32 %v5643_v6, %v1716_v2  ;;  %v1725_v8 = vpop.xlane.xlu1 %1724 }
 0x369   : > { %5648 = vrcp.f32 %v1725_v8 }
 0x36a   : > { %v1734_v9 = vsub.f32 2.0, %v1730_v7 }
 0x36b   : > { %v5645_v10 = vpop.eup %5644 }
 0x36c   : > { %v1738_v13 = vmul.f32 %v5643_v6, %v1734_v9  ;;  %v1731_v14 = vmul.f32 %v5645_v10, %v1719_v3  ;;  %v2371_v9 = vld [vmem:[%s6783_s5 + $0x8] sm:$0xff] }
 0x36e   : > { %v1742_v15 = vmul.f32 %v5635_v56, %v1738_v13  ;;  %v1735_v16 = vsub.f32 2.0, %v1731_v14  ;;  %v2373_v13 = vld [vmem:[%s6783_s5 + $0x18] sm:$0xff] }
 0x36f   : > { %v5647_v17 = vpop.eup %5646  ;;  %v5503_v14 = vpack.c.bf16 %v2373_v13, %v2372_v11 }
 0x370   : > { %v1739_v19 = vmul.f32 %v5645_v10, %v1735_v16  ;;  %v1732_v22 = vmul.f32 %v5647_v17, %v1722_v5  ;;  %5250 = vmatmul.mubr.msk.f32.vlgmr.msra.gmra.mrb[22].mxu0 %vm1381_vm2, %v1742_v15  ;;  %v2452_v15 = vld [vmem:[%s6784_s6] sm:$0xff]  ;;  %v2453_v16 = vld [vmem:[%s6784_s6 + $0x8] sm:$0xff] }
 0x371   : > { %5258 = vmatpush3.msra.mxu0 %v6236_v21  ;;  %5259 = vmatprep.mubr.msk.f32.mxu0 %vm5838_vm0, %v5837_v0  ;;  %v5506_v18 = vpack.c.bf16 %v2453_v16, %v2452_v15  ;;  %v2558_v15 = vsub.s32 5, %v6179_v20  ;;  %v2563_v16 = vsub.s32 6, %v6179_v20 }
 0x372   : > { %v1743_v23 = vmul.f32 %v5637_v59, %v1739_v19  ;;  %v1736_v24 = vsub.f32 2.0, %v1732_v22  ;;  %5267 = vmatprep.subr.mxu0 %v5837_v0  ;;  %v2455_v19 = vld [vmem:[%s6784_s6 + $0x18] sm:$0xff] }
 0x373   : > { %v5649_v12 = vpop.eup %5648 }
 0x374   : > { %v1740_v28 = vmul.f32 %v5647_v17, %v1736_v24  ;;  %v1733_v29 = vmul.f32 %v5649_v12, %v1725_v8  ;;  %5255 = vmatmul.mubr.msk.f32.vlgmr.msra.gmra.mrb[10].mxu1 %vm1381_vm2, %v1743_v23  ;;  %v2370_v8 = vld [vmem:[%s6783_s5] sm:$0xff]  ;;  %v2454_v17 = vld [vmem:[%s6784_s6 + $0x10] sm:$0xff]  ;;  %v2457_v24 = vld [vmem:[%s6784_s6 + $0x28] sm:$0xff] }
 0x375   : > { %5263 = vmatpush3.msra.mxu1 %v1378_v27  ;;  %5264 = vmatprep.mubr.msk.f32.mxu1 %vm5838_vm0, %v5837_v0  ;;  %v5500_v10 = vpack.c.bf16 %v2371_v9, %v2370_v8  ;;  %v5509_v22 = vpack.c.bf16 %v2455_v19, %v2454_v17  ;;  %v2456_v23 = vld [vmem:[%s6784_s6 + $0x20] sm:$0xff]  ;;  %v2458_v27 = vld [vmem:[%s6784_s6 + $0x30] sm:$0xff]  ;;  %v2559_v17 = vrot.slane %v6297_v55, %v2558_v15 }
 0x376   : > { %v1744_v30 = vmul.f32 %v5639_v61, %v1740_v28  ;;  %v1737_v21 = vsub.f32 2.0, %v1733_v29  ;;  %5272 = vmatprep.subr.mxu1 %v5837_v0  ;;  %v2459_v28 = vld [vmem:[%s6784_s6 + $0x38] sm:$0xff]  ;;  %v4943_v9 = vld [vmem:[%s6780_s2 + $0x60] sm:$0xff]  ;;  %v2564_v19 = vrot.slane %v6297_v55, %v2563_v16 }
 0x377   : > { %v5515_v29 = vpack.c.bf16 %v2459_v28, %v2458_v27  ;;  %v4952_v27 = vld [vmem:[%s6780_s2 + $0xa8] sm:$0xff]  ;;  %v4954_v28 = vld [vmem:[%s6780_s2 + $0xb8] sm:$0xff] }
 0x378   : > { %v1741_v31 = vmul.f32 %v5649_v12, %v1737_v21  ;;  %5260 = vmatmul.mubr.msk.f32.vlgmr.msra.gmra.mrb[24].mxu0 %vm1381_vm2, %v1744_v30  ;;  %v5512_v12 = vpack.c.bf16 %v2457_v24, %v2456_v23  ;;  %v2460_v30 = vld [vmem:[%s6784_s6 + $0x40] sm:$0xff]  ;;  %v2461_v21 = vld [vmem:[%s6784_s6 + $0x48] sm:$0xff] }
 0x379   : > { %5269 = vmatprep.mubr.msk.f32.mxu0 %vm5838_vm0, %v5837_v0  ;;  %5268 = vmatpush3.msra.mxu0 %v2038_v26  ;;  %v2463_v26 = vld [vmem:[%s6784_s6 + $0x58] sm:$0xff] }
 0x37a   : > { %v1745_v32 = vmul.f32 %v5641_v63, %v1741_v31  ;;  %5277 = vmatprep.subr.mxu0 %v5837_v0  ;;  %v5518_v31 = vpack.c.bf16 %v2461_v21, %v2460_v30  ;;  %v4947_v30 = vld [vmem:[%s6780_s2 + $0x80] sm:$0xff]  ;;  %v4948_v21 = vld [vmem:[%s6780_s2 + $0x88] sm:$0xff] }
 0x37c   : > { %5265 = vmatmul.mubr.msk.f32.vlgmr.msra.gmra.mrb[12].mxu1 %vm1381_vm2, %v1745_v32  ;;  %v2462_v32 = vld [vmem:[%s6784_s6 + $0x50] sm:$0xff] }
 0x37d   : > { %5274 = vmatprep.mubr.msk.f32.mxu1 %vm5838_vm0, %v5837_v0  ;;  %5273 = vmatpush3.msra.mxu1 %v2039_v33  ;;  %v5521_v33 = vpack.c.bf16 %v2463_v26, %v2462_v32  ;;  %v4951_v32 = vld [vmem:[%s6780_s2 + $0xa0] sm:$0xff]  ;;  %v4953_v26 = vld [vmem:[%s6780_s2 + $0xb0] sm:$0xff] }
 0x37e   : > { %5282 = vmatprep.subr.mxu1 %v5837_v0 }
 0x443   : > { %v1815_v35 = vpop.f32.mrb[22].mxu0 }
 0x444   : > { %v5251_v37 = vpop.f32.mrb[23].mxu0  ;;  %5270 = vmatmul.mubr.msk.f32.vlgmr.msra.gmra.mrb[26].mxu0 %vm1381_vm2, %v1815_v35  ;;  %v2465_v35 = vld [vmem:[%s6784_s6 + $0x68] sm:$0xff] }
 0x445   : > { %5278 = vmatpush3.msra.mxu0 %v2040_v34  ;;  %5279 = vmatprep.mubr.msk.f32.mxu0 %vm5838_vm0, %v5837_v0  ;;  %v2464_v34 = vld [vmem:[%s6784_s6 + $0x60] sm:$0xff] }
 0x446   : > { %v5524_v37 = vpack.c.bf16 %v2465_v35, %v2464_v34  ;;  %v4955_v35 = vld [vmem:[%s6781_s3 + $0x10] sm:$0xff] }
 0x447   : > { %v1888_v39 = vpop.f32.mrb[10].mxu1 }
 0x448   : > { %v5256_v40 = vpop.f32.mrb[11].mxu1  ;;  %5275 = vmatmul.mubr.msk.f32.vlgmr.msra.gmra.mrb[14].mxu1 %vm1381_vm2, %v1888_v39 }
 0x449   : > { %5283 = vmatpush3.msra.mxu1 %v2041_v38  ;;  %5284 = vmatprep.mubr.msk.f32.mxu1 %vm5838_vm0, %v5837_v0 }
 0x44b   : > { %v1961_v41 = vpop.f32.mrb[24].mxu0 }
 0x44c   : > { %v5261_v42 = vpop.f32.mrb[25].mxu0  ;;  %5280 = vmatmul.mubr.msk.f32.vlgmr.msra.gmra.mrb[28].mxu0 %vm1381_vm2, %v1961_v41  ;;  %v2362_v41 = vsub.s32 1, %v6179_v20 }
 0x44d   : > { %5295 = vmatprep.mubr.msk.f32.mxu0 %vm5838_vm0, %v5837_v0  ;;  %v2367_v42 = vsub.s32 2, %v6179_v20 }
 0x44f   : > { %v2034_v43 = vpop.f32.mrb[12].mxu1 }
 0x450   : > { %v5266_v44 = vpop.f32.mrb[13].mxu1  ;;  %5285 = vmatmul.mubr.msk.f32.vlgmr.msra.gmra.mrb[16].mxu1 %vm1381_vm2, %v2034_v43  ;;  %v2363_v43 = vrot.slane %v6297_v55, %v2362_v41 }
 0x451   : > { %5330 = vmatprep.mubr.msk.f32.mxu1 %vm5838_vm0, %v5837_v0 }
 0x517   : > { %v2111_v45 = vpop.f32.mrb[26].mxu0 }
 0x518   : > { %v5271_v46 = vpop.f32.mrb[27].mxu0  ;;  %v2334_v48 = vsel %vm501_vm1, %v2111_v45, 0.0 }
 0x519   : > { %v2368_v46 = vrot.slane %v6297_v55, %v2367_v42 }
 0x51b   : > { %v2184_v47 = vpop.f32.mrb[14].mxu1 }
 0x51c   : > { %v2335_v49 = vsel %vm501_vm1, %v2184_v47, 0.0  ;;  %v5276_v50 = vpop.f32.mrb[15].mxu1 }
 0x51d   : > { %v2336_v51 = vadd.f32 %v2335_v49, %v2334_v48  ;;  %v2466_v49 = vld [vmem:[%s6784_s6 + $0x70] sm:$0xff]  ;;  %v2467_v50 = vld [vmem:[%s6784_s6 + $0x78] sm:$0xff] }
 0x51f   : > { %v2257_v52 = vpop.f32.mrb[28].mxu0 }
 0x520   : > { %v2337_v53 = vsel %vm501_vm1, %v2257_v52, 0.0  ;;  %v5281_v54 = vpop.f32.mrb[29].mxu0  ;;  %v2376_v52 = vsub.s32 3, %v6179_v20 }
 0x521   : > { %v2338_v56 = vadd.f32 %v2337_v53, %v2336_v51  ;;  %v5527_v51 = vpack.c.bf16 %v2467_v50, %v2466_v49 }
 0x522   : > { %v2377_v53 = vrot.slane %v6297_v55, %v2376_v52 }
 0x523   : > { %v2330_v57 = vpop.f32.mrb[16].mxu1 }
 0x524   : > { %v2339_v59 = vsel %vm501_vm1, %v2330_v57, 0.0  ;;  %v5286_v60 = vpop.f32.mrb[17].mxu1 }
 0x525   : > { %v2340_v61 = vadd.f32 %v2339_v59, %v2338_v56  ;;  %v2470_v59 = vsub.s32 4, %v6179_v20 }
 0x527   : > { %v2345_v62 = vadd.f32 %v2344_v58, %v2340_v61  ;;  %v2471_v60 = vrot.slane %v6297_v55, %v2470_v59  ;;  %v4945_v55 = vld [vmem:[%s6780_s2 + $0x70] sm:$0xff] }
 0x529   : > { %v2346_v63 = vadd.f32 %v2345_v62, %v6073_v4  ;;  %v5840_v4 = vmov 0.0|0.0  }
 0x52a   : > { %5499 = vmatprep.subr.bf16.mxu0 %v5840_v4  ;;  %5505 = vmatprep.subr.bf16.mxu1 %v5840_v4 }
 0x52b   : > { %v2347_v1 = vsel %vm501_vm1, %v2346_v63, 0.0  ;;  %5501 = vmatpush3.bf16.msra.mxu0 %v5500_v10  ;;  %5507 = vmatpush3.bf16.msra.mxu1 %v5506_v18  ;;  %v4950_v10 = vld [vmem:[%s6780_s2 + $0x98] sm:$0xff] }
 0x52c   : > { %2348 = vadd.xlane.f32.xlu0 %v2347_v1  ;;  %5502 = vmatprep.subr.bf16.mxu0 %v5840_v4 }
 0x52d   : > { %5508 = vmatprep.subr.bf16.mxu1 %v5840_v4 }
 0x52f   : > { %5504 = vmatpush3.bf16.msra.mxu0 %v5503_v14  ;;  %5510 = vmatpush3.bf16.msra.mxu1 %v5509_v22 }
 0x530   : > { %5333 = vmatprep.subr.mxu0 %v5837_v0  ;;  %5511 = vmatprep.subr.bf16.mxu1 %v5840_v4 }
 0x533   : > { %5513 = vmatpush3.bf16.msra.mxu1 %v5512_v12  ;;  %v4944_v12 = vld [vmem:[%s6780_s2 + $0x68] sm:$0xff] }
 0x534   : > { %5514 = vmatprep.subr.bf16.mxu1 %v5840_v4 }
 0x537   : > { %5516 = vmatpush3.bf16.msra.mxu1 %v5515_v29  ;;  %v4946_v29 = vld [vmem:[%s6780_s2 + $0x78] sm:$0xff] }
 0x538   : > { %5517 = vmatprep.subr.bf16.mxu1 %v5840_v4 }
 0x53b   : > { %5519 = vmatpush3.bf16.msra.mxu1 %v5518_v31  ;;  %v4949_v31 = vld [vmem:[%s6780_s2 + $0x90] sm:$0xff] }
 0x53c   : > { %5520 = vmatprep.subr.bf16.mxu1 %v5840_v4 }
 0x53f   : > { %5522 = vmatpush3.bf16.msra.mxu1 %v5521_v33  ;;  %v4957_v33 = vld.sshfl [vmem:[%s6781_s3 + $0x18] sm:$0x33 pattern:$0x75316420] }
 0x540   : > { %5523 = vmatprep.subr.bf16.mxu1 %v5840_v4  ;;  %v2642_v34 = vcombine.high %v4957_v33, %v4957_v33 }
 0x543   : > { %5525 = vmatpush3.bf16.msra.mxu1 %v5524_v37  ;;  %v6525_v37 = vrot.slane %v2642_v34, %v6185_v25 }
 0x544   : > { %5526 = vmatprep.subr.bf16.mxu1 %v5840_v4 }
 0x547   : > { %5528 = vmatpush3.bf16.msra.mxu1 %v5527_v51 }
 0x548   : > { %5368 = vmatprep.subr.mxu1 %v5837_v0 }
 0x5b9   : > { %v2349_v2 = vpop.xlane.xlu0 %2348 }
 0x5ba   : > { %v2350_v3 = vmul.f32 0.03125, %v2349_v2 }
 0x5bc   : > { %v2351_v5 = vsub.f32 %v2346_v63, %v2350_v3 }
 0x5be   : > { %v2352_v6 = vmul.f32 %v2351_v5, %v2351_v5 }
 0x5c0   : > { %v2353_v7 = vsel %vm501_vm1, %v2352_v6, 0.0 }
 0x5c1   : > { %2354 = vadd.xlane.f32.xlu1 %v2353_v7 }
 0x64e   : > { %v2355_v38 = vpop.xlane.xlu1 %2354 }
 0x64f   : > { %v2356_v39 = vmul.f32 0.03125, %v2355_v38 }
 0x651   : > { %v2357_v40 = vadd.f32 1e-05, %v2356_v39 }
 0x653   : > { %5650 = vrsqrt.f32 %v2357_v40  ;;  %v2586_v40 = vcombine.high %v4955_v35, %v4955_v35 }
 0x65d   : > { %v5651_v44 = vpop.eup %5650 }
 0x65e   : > { %v2359_v45 = vmul.f32 %v5651_v44, %v2351_v5 }
 0x660   : > { %v2364_v47 = vmul.f32 %v2363_v43, %v2359_v45  ;;  %v2658_v45 = vcombine.high %v6525_v37, %v6525_v37 }
 0x662   : > { %v2369_v48 = vadd.f32 %v2368_v46, %v2364_v47  ;;  %v2706_v51 = vrot.slane %v2658_v45, %v6191_v36 }
 0x664   : > { %5296 = vmatmul.mubr.msk.f32.vlgmr.msra.gmra.mrb[30].mxu0 %vm501_vm1, %v2369_v48 }
 0x665   : > { %5335 = vmatprep.mubr.msk.f32.mxu0 %vm5838_vm0, %v5837_v0  ;;  %5334 = vmatpush3.xpose.msk.msra.mxu0 %vm501_vm1, %v4943_v9 }
 0x666   : > { %5338 = vmatprep.subr.mxu0 %v5837_v0 }
 0x737   : > { %v2447_v54 = vpop.f32.mrb[30].mxu0 }
 0x738   : > { %v2448_v56 = vadd.f32 %v2447_v54, %v2377_v53  ;;  %v5297_v57 = vpop.f32.mrb[31].mxu0  ;;  %v2593_v53 = vrot.slane %v4955_v35, %v6185_v25 }
 0x73a   : > { %v2451_v58 = vmax.f32 %v2448_v56, 0.0 }
 0x73c   : > { %5331 = vmatmul.mubr.f32.vlgmr.msra.gmra.mrb[18].mxu1 %v2451_v58 }
 0x73d   : > { %5370 = vmatprep.mubr.msk.f32.mxu1 %vm5838_vm0, %v5837_v0  ;;  %5369 = vmatpush3.xpose.msk.msra.mxu1 %vm501_vm1, %v4950_v10 }
 0x73e   : > { %5378 = vmatprep.subr.mxu1 %v5837_v0 }
 0x80f   : > { %v2538_v61 = vpop.f32.mrb[18].mxu1 }
 0x810   : > { %v2539_v62 = vadd.f32 %v2538_v61, %v2471_v60  ;;  %v5332_v63 = vpop.f32.mrb[19].mxu1 }
 0x811   : > { %v2609_v63 = vrot.slane %v2593_v53, %v6185_v25 }
 0x812   : > { %v2542_v1 = vadd.f32 %v2539_v62, %v2369_v48  ;;  %v2600_v48 = vrot.slane %v2586_v40, %v6185_v25 }
 0x814   : > { %v2543_v2 = vsel %vm501_vm1, %v2542_v1, 0.0  ;;  %v2602_v57 = vcombine.high %v2600_v48, %v2600_v48  ;;  %v2616_v62 = vrot.slane %v2600_v48, %v6185_v25 }
 0x815   : > { %2544 = vadd.xlane.f32.xlu0 %v2543_v2 }
 0x8a2   : > { %v2545_v3 = vpop.xlane.xlu0 %2544 }
 0x8a3   : > { %v2546_v5 = vmul.f32 0.03125, %v2545_v3  ;;  %v2630_v3 = vrot.slane %v2602_v57, %v6185_v25 }
 0x8a5   : > { %v2547_v6 = vsub.f32 %v2542_v1, %v2546_v5  ;;  %v2601_v1 = vcombine.high %v2593_v53, %v2593_v53  ;;  %v2634_v10 = vcombine.high %v2630_v3, %v2630_v3 }
 0x8a7   : > { %v2548_v7 = vmul.f32 %v2547_v6, %v2547_v6 }
 0x8a9   : > { %v2549_v8 = vsel %vm501_vm1, %v2548_v7, 0.0  ;;  %v2662_v7 = vrot.slane %v2609_v63, %v6191_v36 }
 0x8aa   : > { %2550 = vadd.xlane.f32.xlu1 %v2549_v8  ;;  %v2623_v8 = vrot.slane %v2601_v1, %v6185_v25 }
 0x937   : > { %v2551_v11 = vpop.xlane.xlu1 %2550 }
 0x938   : > { %v2552_v13 = vmul.f32 0.03125, %v2551_v11 }
 0x93a   : > { %v2553_v14 = vadd.f32 1e-05, %v2552_v13 }
 0x93c   : > { %5652 = vrsqrt.f32 %v2553_v14  ;;  %v2682_v14 = vrot.slane %v2630_v3, %v6191_v36 }
 0x946   : > { %v5653_v18 = vpop.eup %5652 }
 0x947   : > { %v2555_v22 = vmul.f32 %v5653_v18, %v2547_v6  ;;  %v2678_v6 = vrot.slane %v2616_v62, %v6191_v36 }
 0x949   : > { %v2560_v23 = vmul.f32 %v2559_v17, %v2555_v22  ;;  %v2632_v17 = vcombine.high %v2616_v62, %v2616_v62  ;;  %v2631_v22 = vcombine.high %v2609_v63, %v2609_v63 }
 0x94b   : > { %v6418_v24 = vadd.f32 %v2564_v19, %v2560_v23  ;;  %v2666_v19 = vrot.slane %v2623_v8, %v6191_v36  ;;  %v2633_v23 = vcombine.high %v2623_v8, %v2623_v8 }
 0x94d   : > { %5336 = vmatmul.mubr.msk.f32.vlgmr.msra.gmra.mrb[32].mxu0 %vm501_vm1, %v6418_v24  ;;  %5371 = vmatmul.mubr.msk.f32.vlgmr.msra.gmra.mrb[20].mxu1 %vm501_vm1, %v6418_v24 }
 0x94e   : > { %5339 = vmatpush3.xpose.msk.msra.mxu0 %vm501_vm1, %v4944_v12  ;;  %5379 = vmatpush3.xpose.msk.msra.mxu1 %vm501_vm1, %v4952_v27  ;;  %v2690_v27 = vrot.slane %v2634_v10, %v6191_v36 }
 0x94f   : > { %5340 = vmatprep.mubr.msk.f32.mxu0 %vm5838_vm0, %v5837_v0  ;;  %5380 = vmatprep.mubr.msk.f32.mxu1 %vm5838_vm0, %v5837_v0 }
 0x950   : > { %5343 = vmatprep.subr.mxu0 %v5837_v0  ;;  %5388 = vmatprep.subr.mxu1 %v5837_v0 }
 0x951   : > { %5341 = vmatmul.mubr.msk.f32.vlgmr.msra.gmra.mrb[34].mxu0 %vm501_vm1, %v6418_v24  ;;  %5381 = vmatmul.mubr.msk.f32.vlgmr.msra.gmra.mrb[22].mxu1 %vm501_vm1, %v6418_v24 }
 0x952   : > { %5344 = vmatpush3.xpose.msk.msra.mxu0 %vm501_vm1, %v4945_v55  ;;  %5389 = vmatpush3.xpose.msk.msra.mxu1 %vm501_vm1, %v4954_v28 }
 0x953   : > { %5345 = vmatprep.mubr.msk.f32.mxu0 %vm5838_vm0, %v5837_v0  ;;  %5390 = vmatprep.mubr.msk.f32.mxu1 %vm5838_vm0, %v5837_v0 }
 0x954   : > { %5348 = vmatprep.subr.mxu0 %v5837_v0  ;;  %5398 = vmatprep.subr.mxu1 %v5837_v0 }
 0x955   : > { %5346 = vmatmul.mubr.msk.f32.vlgmr.msra.gmra.mrb[36].mxu0 %vm501_vm1, %v6418_v24  ;;  %5391 = vmatmul.mubr.msk.f32.vlgmr.msra.gmra.mrb[24].mxu1 %vm501_vm1, %v6418_v24 }
 0x956   : > { %5349 = vmatpush3.xpose.msk.msra.mxu0 %vm501_vm1, %v4946_v29  ;;  %5350 = vmatprep.mubr.msk.f32.mxu0 %vm5838_vm0, %v5837_v0  ;;  %v2686_v29 = vrot.slane %v2632_v17, %v6191_v36 }
 0x957   : > { %5353 = vmatprep.subr.mxu0 %v5837_v0  ;;  %5400 = vmatprep.mubr.msk.f32.mxu1 %vm5838_vm0, %v5837_v0 }
 0x959   : > { %5351 = vmatmul.mubr.msk.f32.vlgmr.msra.gmra.mrb[38].mxu0 %vm501_vm1, %v6418_v24 }
 0x95a   : > { %5354 = vmatpush3.xpose.msk.msra.mxu0 %vm501_vm1, %v4947_v30  ;;  %5355 = vmatprep.mubr.msk.f32.mxu0 %vm5838_vm0, %v5837_v0  ;;  %v2649_v30 = vrot.slane %v4957_v33, %v6185_v25 }
 0x95b   : > { %5358 = vmatprep.subr.mxu0 %v5837_v0 }
 0x95c   : > { %v2657_v40 = vcombine.high %v2649_v30, %v2649_v30 }
 0x95d   : > { %5356 = vmatmul.mubr.msk.f32.vlgmr.msra.gmra.mrb[40].mxu0 %vm501_vm1, %v6418_v24 }
 0x95e   : > { %5359 = vmatpush3.xpose.msk.msra.mxu0 %vm501_vm1, %v4948_v21  ;;  %5360 = vmatprep.mubr.msk.f32.mxu0 %vm5838_vm0, %v5837_v0  ;;  %v2702_v48 = vrot.slane %v2657_v40, %v6191_v36 }
 0x95f   : > { %5363 = vmatprep.subr.mxu0 %v5837_v0 }
 0x961   : > { %5361 = vmatmul.mubr.msk.f32.vlgmr.msra.gmra.mrb[42].mxu0 %vm501_vm1, %v6418_v24 }
 0x962   : > { %5364 = vmatpush3.xpose.msk.msra.mxu0 %vm501_vm1, %v4949_v31  ;;  %5365 = vmatprep.mubr.msk.f32.mxu0 %vm5838_vm0, %v5837_v0  ;;  %v2698_v31 = vrot.slane %v6525_v37, %v6191_v36 }
 0x963   : > { %5373 = vmatprep.subr.mxu0 %v5837_v0 }
 0x965   : > { %5366 = vmatmul.mubr.msk.f32.vlgmr.msra.gmra.mrb[44].mxu0 %vm501_vm1, %v6418_v24 }
 0x966   : > { %5374 = vmatpush3.xpose.msk.msra.mxu0 %vm501_vm1, %v4951_v32  ;;  %5375 = vmatprep.mubr.msk.f32.mxu0 %vm5838_vm0, %v5837_v0  ;;  %v2670_v32 = vrot.slane %v2631_v22, %v6191_v36 }
 0x967   : > { %5383 = vmatprep.subr.mxu0 %v5837_v0 }
 0x969   : > { %5376 = vmatmul.mubr.msk.f32.vlgmr.msra.gmra.mrb[46].mxu0 %vm501_vm1, %v6418_v24 }
 0x96a   : > { %5384 = vmatpush3.xpose.msk.msra.mxu0 %vm501_vm1, %v4953_v26  ;;  %5385 = vmatprep.mubr.msk.f32.mxu0 %vm5838_vm0, %v5837_v0  ;;  %v2674_v26 = vrot.slane %v2633_v23, %v6191_v36 }
 0x96b   : > { %5393 = vmatprep.subr.mxu0 %v5837_v0 }
 0x96d   : > { %5386 = vmatmul.mubr.msk.f32.vlgmr.msra.gmra.mrb[48].mxu0 %vm501_vm1, %v6418_v24 }
 0x96e   : > { %5395 = vmatprep.mubr.msk.f32.mxu0 %vm5838_vm0, %v5837_v0 }
 0xa20   : > { %v2791_v38 = vpop.f32.mrb[32].mxu0  ;;  %v3302_v39 = vpop.f32.mrb[20].mxu1 }
 0xa21   : > { %v5337_v43 = vpop.f32.mrb[33].mxu0  ;;  %v5372_v44 = vpop.f32.mrb[21].mxu1  ;;  %v2792_v18 = vadd.f32 %v2791_v38, %v2662_v7  ;;  %v3303_v35 = vadd.f32 %v3302_v39, %v2690_v27  ;;  %v2694_v38 = vrot.slane %v2649_v30, %v6191_v36 }
 0xa24   : > { %v2864_v46 = vpop.f32.mrb[34].mxu0  ;;  %v3448_v47 = vpop.f32.mrb[22].mxu1 }
 0xa25   : > { %v5342_v49 = vpop.f32.mrb[35].mxu0  ;;  %v5382_v50 = vpop.f32.mrb[23].mxu1  ;;  %v2865_v21 = vadd.f32 %v2864_v46, %v2666_v19  ;;  %v3449_v39 = vadd.f32 %v3448_v47, %v2698_v31 }
 0xa28   : > { %v2937_v54 = vpop.f32.mrb[36].mxu0  ;;  %v3594_v56 = vpop.f32.mrb[24].mxu1 }
 0xa29   : > { %v6532_v58 = vadd.f32 %v3594_v56, %v2706_v51  ;;  %v5347_v60 = vpop.f32.mrb[37].mxu0  ;;  %v5392_v61 = vpop.f32.mrb[25].mxu1  ;;  %v2938_v37 = vadd.f32 %v2937_v54, %v2670_v32 }
 0xa2c   : > { %v3010_v2 = vpop.f32.mrb[38].mxu0 }
 0xa2d   : > { %v5352_v5 = vpop.f32.mrb[39].mxu0  ;;  %v3011_v43 = vadd.f32 %v3010_v2, %v2674_v26 }
 0xa30   : > { %v3083_v9 = vpop.f32.mrb[40].mxu0 }
 0xa31   : > { %v3084_v11 = vadd.f32 %v3083_v9, %v2678_v6  ;;  %v5357_v13 = vpop.f32.mrb[41].mxu0 }
 0xa33   : > { %5394 = vmatpush3.xpose.msk.msra.mxu0 %vm1381_vm2, %v3084_v11 }
 0xa34   : > { %v3156_v12 = vpop.f32.mrb[42].mxu0  ;;  %5403 = vmatprep.subr.mxu0 %v5837_v0 }
 0xa35   : > { %v3157_v55 = vadd.f32 %v3156_v12, %v2682_v14  ;;  %v5362_v28 = vpop.f32.mrb[43].mxu0 }
 0xa36   : > { %5396 = vmatmul.mubr.msk.f32.vlgmr.msra.gmra.mrb[50].mxu0 %vm1381_vm2, %v2792_v18 }
 0xa37   : > { %5399 = vmatpush3.xpose.msk.msra.mxu1 %vm1381_vm2, %v3157_v55  ;;  %5405 = vmatprep.mubr.msk.f32.mxu0 %vm5838_vm0, %v5837_v0 }
 0xa38   : > { %v3229_v34 = vpop.f32.mrb[44].mxu0  ;;  %5408 = vmatprep.subr.mxu1 %v5837_v0 }
 0xa39   : > { %v3230_v25 = vadd.f32 %v3229_v34, %v2686_v29  ;;  %v5367_v33 = vpop.f32.mrb[45].mxu0 }
 0xa3a   : > { %5401 = vmatmul.mubr.msk.f32.vlgmr.msra.gmra.mrb[26].mxu1 %vm1381_vm2, %v2865_v21 }
 0xa3b   : > { %5404 = vmatpush3.xpose.msk.msra.mxu0 %vm1381_vm2, %v3230_v25  ;;  %5409 = vmatpush3.xpose.msk.msra.mxu1 %vm1381_vm2, %v3303_v35 }
 0xa3c   : > { %v3375_v44 = vpop.f32.mrb[46].mxu0  ;;  %5410 = vmatprep.mubr.msk.f32.mxu1 %vm5838_vm0, %v5837_v0  ;;  %5413 = vmatprep.subr.mxu0 %v5837_v0 }
 0xa3d   : > { %v3376_v45 = vadd.f32 %v3375_v44, %v2694_v38  ;;  %v5377_v46 = vpop.f32.mrb[47].mxu0  ;;  %5418 = vmatprep.subr.mxu1 %v5837_v0 }
 0xa3e   : > { %5406 = vmatmul.mubr.msk.f32.vlgmr.msra.gmra.mrb[52].mxu0 %vm1381_vm2, %v2938_v37  ;;  %5411 = vmatmul.mubr.msk.f32.vlgmr.msra.gmra.mrb[28].mxu1 %vm1381_vm2, %v3011_v43 }
 0xa3f   : > { %5414 = vmatpush3.msra.mxu0 %v3376_v45  ;;  %5419 = vmatpush3.msra.mxu1 %v3449_v39 }
 0xa40   : > { %v3521_v49 = vpop.f32.mrb[48].mxu0  ;;  %5415 = vmatprep.mubr.msk.f32.mxu0 %vm5838_vm0, %v5837_v0  ;;  %5423 = vmatprep.subr.mxu0 %v5837_v0 }
 0xa41   : > { %v6570_v50 = vadd.f32 %v3521_v49, %v2702_v48  ;;  %v5387_v47 = vpop.f32.mrb[49].mxu0  ;;  %5420 = vmatprep.mubr.msk.f32.mxu1 %vm5838_vm0, %v5837_v0  ;;  %5428 = vmatprep.subr.mxu1 %v5837_v0 }
 0xb09   : > { %v3670_v51 = vpop.f32.mrb[50].mxu0 }
 0xb0a   : > { %v3902_v53 = vmul.f32 0.35355338, %v3670_v51  ;;  %v5397_v54 = vpop.f32.mrb[51].mxu0 }
 0xb0c   : > { %v3906_v56 = vsel %vm1381_vm2, %v3902_v53, -inf }
 0xb0d   : > { %v3746_v57 = vpop.f32.mrb[26].mxu1  ;;  %3907 = vmax.xlane.f32.xlu0 %v3906_v56 }
 0xb0e   : > { %v3903_v60 = vmul.f32 0.35355338, %v3746_v57  ;;  %v5402_v61 = vpop.f32.mrb[27].mxu1 }
 0xb10   : > { %v3909_v62 = vsel %vm1381_vm2, %v3903_v60, -inf }
 0xb11   : > { %3910 = vmax.xlane.f32.xlu1 %v3909_v62  ;;  %v3822_v63 = vpop.f32.mrb[52].mxu0  ;;  %v3898_v1 = vpop.f32.mrb[28].mxu1 }
 0xb12   : > { %v3904_v2 = vmul.f32 0.35355338, %v3822_v63  ;;  %v3905_v3 = vmul.f32 0.35355338, %v3898_v1  ;;  %v5407_v5 = vpop.f32.mrb[53].mxu0  ;;  %v5412_v6 = vpop.f32.mrb[29].mxu1 }
 0xb13   : > { %v4995_v63 = vld [vmem:[%s6782_s4 + $0x28] sm:$0xff]  ;;  %v4996_v1 = vld [vmem:[%s6782_s4 + $0x30] sm:$0xff]  ;;  %v4997_v5 = vld [vmem:[%s6782_s4 + $0x38] sm:$0xff] }
 0xb14   : > { %v3915_v7 = vsel %vm1381_vm2, %v3905_v3, -inf  ;;  %v3912_v8 = vsel %vm1381_vm2, %v3904_v2, -inf }
 0xb15   : > { %3916 = vmax.xlane.f32.xlu1 %v3915_v7  ;;  %3913 = vmax.xlane.f32.xlu0 %v3912_v8 }
 0xb9a   : > { %v3908_v9 = vpop.xlane.xlu0 %3907 }
 0xb9b   : > { %v3918_v10 = vsub.f32 %v3902_v53, %v3908_v9 }
 0xb9d   : > { %v3922_v11 = vmul.f32 1.442695, %v3918_v10 }
 0xb9e   : > { %v3911_v13 = vpop.xlane.xlu1 %3910 }
 0xb9f   : > { %5654 = vpow2.f32 %v3922_v11  ;;  %v3919_v14 = vsub.f32 %v3903_v60, %v3911_v13 }
 0xba1   : > { %v3924_v17 = vmul.f32 1.442695, %v3919_v14 }
 0xba2   : > { %v3917_v18 = vpop.xlane.xlu1 %3916  ;;  %v3914_v19 = vpop.xlane.xlu0 %3913 }
 0xba3   : > { %5656 = vpow2.f32 %v3924_v17  ;;  %v3921_v22 = vsub.f32 %v3905_v3, %v3917_v18  ;;  %v3920_v23 = vsub.f32 %v3904_v2, %v3914_v19 }
 0xba5   : > { %v3928_v12 = vmul.f32 1.442695, %v3921_v22  ;;  %v3926_v27 = vmul.f32 1.442695, %v3920_v23 }
 0xba7   : > { %5658 = vpow2.f32 %v3928_v12  ;;  %v6629_v12 = vld [vmem:[#allocation7 + $0x8] sm:$0xff] }
 0xba8   : > { %5660 = vpow2.f32 %v3926_v27 }
 0xba9   : > { %v5655_v55 = vpop.eup %5654 }
 0xbaa   : > { %v3930_v28 = vsel %vm1381_vm2, %v5655_v55, 0.0 }
 0xbab   : > { %3931 = vadd.xlane.f32.xlu0 %v3930_v28 }
 0xbad   : > { %v5657_v29 = vpop.eup %5656 }
 0xbae   : > { %v3933_v30 = vsel %vm1381_vm2, %v5657_v29, 0.0 }
 0xbaf   : > { %3934 = vadd.xlane.f32.xlu1 %v3933_v30 }
 0xbb1   : > { %v5659_v21 = vpop.eup %5658 }
 0xbb2   : > { %v5661_v31 = vpop.eup %5660  ;;  %v3939_v32 = vsel %vm1381_vm2, %v5659_v21, 0.0 }
 0xbb3   : > { %3940 = vadd.xlane.f32.xlu1 %v3939_v32  ;;  %v3936_v26 = vsel %vm1381_vm2, %v5661_v31, 0.0 }
 0xbb4   : > { %3937 = vadd.xlane.f32.xlu0 %v3936_v26 }
 0xc38   : > { %v3932_v34 = vpop.xlane.xlu0 %3931 }
 0xc39   : > { %5662 = vrcp.f32 %v3932_v34 }
 0xc3c   : > { %v3935_v35 = vpop.xlane.xlu1 %3934 }
 0xc3d   : > { %5664 = vrcp.f32 %v3935_v35 }
 0xc40   : > { %v3941_v25 = vpop.xlane.xlu1 %3940 }
 0xc41   : > { %5666 = vrcp.f32 %v3941_v25  ;;  %v3938_v33 = vpop.xlane.xlu0 %3937 }
 0xc42   : > { %5668 = vrcp.f32 %v3938_v33 }
 0xc43   : > { %v5663_v38 = vpop.eup %5662 }
 0xc44   : > { %v3946_v40 = vmul.f32 %v5663_v38, %v3932_v34 }
 0xc46   : > { %v3950_v37 = vsub.f32 2.0, %v3946_v40 }
 0xc47   : > { %v5665_v43 = vpop.eup %5664 }
 0xc48   : > { %v3954_v44 = vmul.f32 %v5663_v38, %v3950_v37  ;;  %v3947_v39 = vmul.f32 %v5665_v43, %v3935_v35 }
 0xc4a   : > { %v3958_v45 = vmul.f32 %v5655_v55, %v3954_v44  ;;  %v3951_v46 = vsub.f32 2.0, %v3947_v39  ;;  %v5005_v39 = vld [vmem:[%s6783_s5 + $0x38] sm:$0xff] }
 0xc4b   : > { %v5667_v48 = vpop.eup %5666 }
 0xc4c   : > { %v5669_v49 = vpop.eup %5668  ;;  %v3955_v47 = vmul.f32 %v5665_v43, %v3951_v46  ;;  %v3949_v51 = vmul.f32 %v5667_v48, %v3941_v25  ;;  %5416 = vmatmul.mubr.msk.f32.vlgmr.msra.gmra.mrb[54].mxu0 %vm1381_vm2, %v3958_v45  ;;  %v5003_v43 = vld [vmem:[%s6783_s5 + $0x28] sm:$0xff]  ;;  %v5007_v46 = vld [vmem:[%s6784_s6 + $0x80] sm:$0xff] }
 0xc4d   : > { %v3948_v53 = vmul.f32 %v5669_v49, %v3938_v33  ;;  %5424 = vmatpush3.msra.mxu0 %v6570_v50  ;;  %5425 = vmatprep.mubr.msk.f32.mxu0 %vm5838_vm0, %v5837_v0 }
 0xc4e   : > { %v3959_v54 = vmul.f32 %v5657_v29, %v3955_v47  ;;  %v3953_v56 = vsub.f32 2.0, %v3949_v51  ;;  %5433 = vmatprep.subr.mxu0 %v5837_v0  ;;  %v5010_v51 = vld [vmem:[%s6784_s6 + $0x98] sm:$0xff] }
 0xc4f   : > { %v3952_v57 = vsub.f32 2.0, %v3948_v53 }
 0xc50   : > { %v3957_v60 = vmul.f32 %v5667_v48, %v3953_v56  ;;  %5421 = vmatmul.mubr.msk.f32.vlgmr.msra.gmra.mrb[30].mxu1 %vm1381_vm2, %v3959_v54  ;;  %v5008_v48 = vld [vmem:[%s6784_s6 + $0x88] sm:$0xff]  ;;  %v5011_v54 = vld [vmem:[%s6784_s6 + $0xa0] sm:$0xff] }
 0xc51   : > { %v3956_v61 = vmul.f32 %v5669_v49, %v3952_v57  ;;  %5429 = vmatpush3.msra.mxu1 %v6532_v58  ;;  %5430 = vmatprep.mubr.msk.f32.mxu1 %vm5838_vm0, %v5837_v0  ;;  %v4994_v58 = vld [vmem:[%s6782_s4 + $0x20] sm:$0xff]  ;;  %v5009_v49 = vld [vmem:[%s6784_s6 + $0x90] sm:$0xff]  ;;  %v5536_v47 = vpack.c.bf16 %v5008_v48, %v5007_v46  ;;  %v5012_v56 = vld [vmem:[%s6784_s6 + $0xa8] sm:$0xff] }
 0xc52   : > { %v3961_v62 = vmul.f32 %v5659_v21, %v3957_v60  ;;  %5438 = vmatprep.subr.mxu1 %v5837_v0  ;;  %v5539_v53 = vpack.c.bf16 %v5010_v51, %v5009_v49  ;;  %v5542_v57 = vpack.c.bf16 %v5012_v56, %v5011_v54  ;;  %v5013_v60 = vld [vmem:[%s6784_s6 + $0xb0] sm:$0xff] }
 0xc53   : > { %v3960_v50 = vmul.f32 %v5661_v31, %v3956_v61  ;;  %v5014_v61 = vld [vmem:[%s6784_s6 + $0xb8] sm:$0xff] }
 0xc54   : > { %5431 = vmatmul.mubr.msk.f32.vlgmr.msra.gmra.mrb[32].mxu1 %vm1381_vm2, %v3961_v62  ;;  %v5545_v62 = vpack.c.bf16 %v5014_v61, %v5013_v60 }
 0xc55   : > { %5426 = vmatmul.mubr.msk.f32.vlgmr.msra.gmra.mrb[56].mxu0 %vm1381_vm2, %v3960_v50  ;;  %5440 = vmatprep.mubr.msk.f32.mxu1 %vm5838_vm0, %v5837_v0  ;;  %v5015_v50 = vld [vmem:[%s6784_s6 + $0xc0] sm:$0xff] }
 0xc56   : > { %5435 = vmatprep.mubr.msk.f32.mxu0 %vm5838_vm0, %v5837_v0  ;;  %5434 = vmatpush3.msra.mxu0 %v4994_v58  ;;  %v5016_v58 = vld [vmem:[%s6784_s6 + $0xc8] sm:$0xff] }
 0xc57   : > { %5443 = vmatprep.subr.mxu0 %v5837_v0  ;;  %5439 = vmatpush3.msra.mxu1 %v4995_v63  ;;  %v5548_v63 = vpack.c.bf16 %v5016_v58, %v5015_v50 }
 0xc58   : > { %5448 = vmatprep.subr.mxu1 %v5837_v0 }
 0xd1f   : > { %v4031_v2 = vpop.f32.mrb[54].mxu0 }
 0xd20   : > { %v5417_v3 = vpop.f32.mrb[55].mxu0  ;;  %5436 = vmatmul.mubr.msk.f32.vlgmr.msra.gmra.mrb[58].mxu0 %vm1381_vm2, %v4031_v2  ;;  %v5018_v2 = vld [vmem:[%s6784_s6 + $0xd8] sm:$0xff] }
 0xd21   : > { %5444 = vmatpush3.msra.mxu0 %v4996_v1  ;;  %5445 = vmatprep.mubr.msk.f32.mxu0 %vm5838_vm0, %v5837_v0  ;;  %v5017_v1 = vld [vmem:[%s6784_s6 + $0xd0] sm:$0xff] }
 0xd22   : > { %5529 = vmatprep.subr.bf16.mxu0 %v5840_v4  ;;  %v5551_v3 = vpack.c.bf16 %v5018_v2, %v5017_v1 }
 0xd23   : > { %v4104_v6 = vpop.f32.mrb[30].mxu1 }
 0xd24   : > { %v5422_v7 = vpop.f32.mrb[31].mxu1  ;;  %5441 = vmatmul.mubr.msk.f32.vlgmr.msra.gmra.mrb[34].mxu1 %vm1381_vm2, %v4104_v6  ;;  %v5020_v6 = vld [vmem:[%s6784_s6 + $0xe8] sm:$0xff] }
 0xd25   : > { %5449 = vmatpush3.msra.mxu1 %v4997_v5  ;;  %5450 = vmatprep.mubr.msk.f32.mxu1 %vm5838_vm0, %v5837_v0  ;;  %v5019_v5 = vld [vmem:[%s6784_s6 + $0xe0] sm:$0xff] }
 0xd26   : > { %5535 = vmatprep.subr.bf16.mxu1 %v5840_v4  ;;  %v5554_v7 = vpack.c.bf16 %v5020_v6, %v5019_v5 }
 0xd27   : > { %v4250_v8 = vpop.f32.mrb[32].mxu1 }
 0xd28   : > { %v4177_v9 = vpop.f32.mrb[56].mxu0  ;;  %v5432_v10 = vpop.f32.mrb[33].mxu1  ;;  %5451 = vmatmul.mubr.msk.f32.vlgmr.msra.gmra.mrb[36].mxu1 %vm1381_vm2, %v4250_v8 }
 0xd29   : > { %v5427_v11 = vpop.f32.mrb[57].mxu0  ;;  %5446 = vmatmul.mubr.msk.f32.vlgmr.msra.gmra.mrb[60].mxu0 %vm1381_vm2, %v4177_v9  ;;  %5496 = vmatprep.mubr.msk.f32.mxu1 %vm5838_vm0, %v5837_v0 }
 0xd2a   : > { %5461 = vmatprep.mubr.msk.f32.mxu0 %vm5838_vm0, %v5837_v0  ;;  %v4561_v0 = vrot.slane %v6629_v12, %v6191_v36  ;;  %v5002_v36 = vld [vmem:[%s6783_s5 + $0x20] sm:$0xff]  ;;  %5537 = vmatpush3.bf16.msra.mxu1 %v5536_v47  ;;  %v4580_v11 = vrot.slane %v6629_v12, %v2362_v41  ;;  %v4595_v41 = vrot.slane %v6629_v12, %v2376_v52 }
 0xd2b   : > { %v5530_v44 = vpack.c.bf16 %v5003_v43, %v5002_v36  ;;  %5538 = vmatprep.subr.bf16.mxu1 %v5840_v4  ;;  %v4783_v43 = vrot.slane %v6629_v12, %v2563_v16 }
 0xd2d   : > { %5531 = vmatpush3.bf16.msra.mxu0 %v5530_v44 }
 0xd2e   : > { %5532 = vmatprep.subr.bf16.mxu0 %v5840_v4  ;;  %5540 = vmatpush3.bf16.msra.mxu1 %v5539_v53 }
 0xd2f   : > { %5541 = vmatprep.subr.bf16.mxu1 %v5840_v4 }
 0xd32   : > { %5543 = vmatpush3.bf16.msra.mxu1 %v5542_v57 }
 0xd33   : > { %5544 = vmatprep.subr.bf16.mxu1 %v5840_v4 }
 0xd36   : > { %5546 = vmatpush3.bf16.msra.mxu1 %v5545_v62 }
 0xd37   : > { %5547 = vmatprep.subr.bf16.mxu1 %v5840_v4 }
 0xd3a   : > { %5549 = vmatpush3.bf16.msra.mxu1 %v5548_v63 }
 0xd3b   : > { %5550 = vmatprep.subr.bf16.mxu1 %v5840_v4 }
 0xd3e   : > { %5552 = vmatpush3.bf16.msra.mxu1 %v5551_v3 }
 0xd3f   : > { %5553 = vmatprep.subr.bf16.mxu1 %v5840_v4 }
 0xd42   : > { %5555 = vmatpush3.bf16.msra.mxu1 %v5554_v7 }
 0xd43   : > { %5556 = vmatprep.subr.bf16.mxu1 %v5840_v4  ;;  %v5021_v4 = vld [vmem:[%s6784_s6 + $0xf0] sm:$0xff] }
 0xdf3   : > { %v4328_v13 = vpop.f32.mrb[58].mxu0 }
 0xdf4   : > { %v5437_v14 = vpop.f32.mrb[59].mxu0  ;;  %v4551_v18 = vsel %vm501_vm1, %v4328_v13, 0.0 }
 0xdf7   : > { %v4401_v17 = vpop.f32.mrb[34].mxu1 }
 0xdf8   : > { %v4552_v19 = vsel %vm501_vm1, %v4401_v17, 0.0  ;;  %v5442_v22 = vpop.f32.mrb[35].mxu1  ;;  %v4585_v17 = vrot.slane %v6629_v12, %v2367_v42 }
 0xdf9   : > { %v4553_v23 = vadd.f32 %v4552_v19, %v4551_v18  ;;  %v5022_v22 = vld [vmem:[%s6784_s6 + $0xf8] sm:$0xff] }
 0xdfb   : > { %v4547_v27 = vpop.f32.mrb[36].mxu1 }
 0xdfc   : > { %v4474_v55 = vpop.f32.mrb[60].mxu0  ;;  %v5452_v28 = vpop.f32.mrb[37].mxu1  ;;  %v4556_v31 = vsel %vm501_vm1, %v4547_v27, 0.0 }
 0xdfd   : > { %v4554_v29 = vsel %vm501_vm1, %v4474_v55, 0.0  ;;  %v5447_v30 = vpop.f32.mrb[61].mxu0 }
 0xdfe   : > { %v4555_v21 = vadd.f32 %v4554_v29, %v4553_v23  ;;  %v5557_v23 = vpack.c.bf16 %v5022_v22, %v5021_v4  ;;  %v4690_v29 = vrot.slane %v6629_v12, %v2470_v59 }
 0xe00   : > { %v4557_v32 = vadd.f32 %v4556_v31, %v4555_v21  ;;  %5558 = vmatpush3.bf16.msra.mxu1 %v5557_v23 }
 0xe02   : > { %v4562_v26 = vadd.f32 %v4561_v0, %v4557_v32 }
 0xe04   : > { %v4563_v34 = vadd.f32 %v4562_v26, %v6418_v24  ;;  %v5004_v24 = vld [vmem:[%s6783_s5 + $0x30] sm:$0xff] }
 0xe05   : > { %v5533_v45 = vpack.c.bf16 %v5005_v39, %v5004_v24 }
 0xe06   : > { %v4564_v35 = vsel %vm501_vm1, %v4563_v34, 0.0 }
 0xe07   : > { %4565 = vadd.xlane.f32.xlu0 %v4564_v35  ;;  %5534 = vmatpush3.bf16.msra.mxu0 %v5533_v45 }
 0xe94   : > { %v4566_v25 = vpop.xlane.xlu0 %4565 }
 0xe95   : > { %v4567_v33 = vmul.f32 0.03125, %v4566_v25 }
 0xe97   : > { %v4568_v38 = vsub.f32 %v4563_v34, %v4567_v33 }
 0xe99   : > { %v4569_v40 = vmul.f32 %v4568_v38, %v4568_v38 }
 0xe9b   : > { %v4570_v37 = vsel %vm501_vm1, %v4569_v40, 0.0  ;;  %v4778_v40 = vrot.slane %v6629_v12, %v2558_v15 }
 0xe9c   : > { %4571 = vadd.xlane.f32.xlu1 %v4570_v37 }
 0xf29   : > { %v4572_v8 = vpop.xlane.xlu1 %4571 }
 0xf2a   : > { %v4573_v9 = vmul.f32 0.03125, %v4572_v8 }
 0xf2c   : > { %v4574_v10 = vadd.f32 1e-05, %v4573_v9 }
 0xf2e   : > { %5670 = vrsqrt.f32 %v4574_v10 }
 0xf38   : > { %v5671_v13 = vpop.eup %5670 }
 0xf39   : > { %v4576_v14 = vmul.f32 %v5671_v13, %v4568_v38 }
 0xf3b   : > { %v4581_v18 = vmul.f32 %v4580_v11, %v4576_v14 }
 0xf3d   : > { %v4586_v19 = vadd.f32 %v4585_v17, %v4581_v18 }
 0xf3f   : > { %5462 = vmatmul.mubr.msk.f32.vlgmr.msra.gmra.mrb[62].mxu0 %vm501_vm1, %v4586_v19 }
0x1012   : > { %v4665_v27 = vpop.f32.mrb[62].mxu0 }
0x1013   : > { %v4666_v42 = vadd.f32 %v4665_v27, %v4595_v41  ;;  %v5463_v55 = vpop.f32.mrb[63].mxu0 }
0x1015   : > { %v4669_v28 = vmax.f32 %v4666_v42, 0.0 }
0x1017   : > { %5497 = vmatmul.mubr.f32.vlgmr.msra.gmra.mrb[38].mxu1 %v4669_v28 }
0x10ea   : > { %v4757_v30 = vpop.f32.mrb[38].mxu1 }
0x10eb   : > { %v4758_v21 = vadd.f32 %v4757_v30, %v4690_v29  ;;  %v5498_v0 = vpop.f32.mrb[39].mxu1 }
0x10ed   : > { %v4761_v31 = vadd.f32 %v4758_v21, %v4586_v19 }
0x10ef   : > { %v4762_v32 = vsel %vm501_vm1, %v4761_v31, 0.0 }
0x10f0   : > { %4763 = vadd.xlane.f32.xlu0 %v4762_v32 }
0x117d   : > { %v4764_v26 = vpop.xlane.xlu0 %4763 }
0x117e   : > { %v4765_v52 = vmul.f32 0.03125, %v4764_v26 }
0x1180   : > { %v4766_v34 = vsub.f32 %v4761_v31, %v4765_v52 }
0x1182   : > { %v4767_v35 = vmul.f32 %v4766_v34, %v4766_v34 }
0x1184   : > { %v4768_v25 = vsel %vm501_vm1, %v4767_v35, 0.0 }
0x1185   : > { %4769 = vadd.xlane.f32.xlu1 %v4768_v25 }
0x1212   : > { %v4770_v33 = vpop.xlane.xlu1 %4769 }
0x1213   : > { %v4771_v38 = vmul.f32 0.03125, %v4770_v33 }
0x1215   : > { %v4772_v59 = vadd.f32 1e-05, %v4771_v38 }
0x1217   : > { %5672 = vrsqrt.f32 %v4772_v59 }
0x1221   : > { %v5673_v37 = vpop.eup %5672 }
0x1222   : > { %v4774_v36 = vmul.f32 %v5673_v37, %v4766_v34 }
0x1224   : > { %v4779_v44 = vmul.f32 %v4778_v40, %v4774_v36 }
0x1226   : > { %v4784_v24 = vadd.f32 %v4783_v43, %v4779_v44 }
0x1228   : > { %4785 = vst.msk [vmem:[%s347_s18] sm:$0xff] %vm501_vm1, %v4784_v24 }
0x1229   : > { %5773 = shalt.err (!%p5770_p7)
}
0x122a   : > { %s5774_s20 = scalar_lea.hbm %s6733_s10, 128  ;;  %s5778_s26 = scalar_lea.hbm %s6786_s8, 256 }
0x122b   : > { %p5775_p10 = scmp.ne.s32.totalorder %s6733_s10, %s5774_s20  ;;  %p5779_p0 = scmp.lt.u32.totalorder %s6733_s10, %s6786_s8 }
0x122c   : > { %p5780_p11 = scmp.lt.u32.totalorder %s5778_s26, %s5774_s20  ;;  %p5782_p2 = scmp.lt.u32.totalorder %s5774_s20, %s6733_s10 }
0x122d   : > { %p5776_p13 = pnand %p5775_p10, %p6000_p4 }
0x122e   : > { %p5781_p9 = por %p5780_p11, %p5779_p0 }
0x122f   : > { %p5777_p5 = pneg %p5776_p13 }
0x1230   : > { %p5783_p1 = por %p5782_p2, %p5781_p9 }
0x1232   : > { %p5784_p6 = pnand %p5783_p1, %p5777_p5 }
0x1234   : > { %5787 = shalt.err (!%p5784_p6)
}
0x1235   : > { %5569 = dma.vmem_to_hbm [thread:$0]  (%p6000_p4), %s6735_s11, 128, %s6733_s10, %s4787_s14  }
0x1236 PF: > { %s4812_s25 = sand.u32 1, %s5818_s27   ;;  %p6801_p8 = scmp.ne.s32.totalorder %s6791_s12, 0 }
0x1237   : > { %p6802_p12 = scmp.ge.s32.totalorder %s5830_s30, 2  ;;  %s4813_s19 = scalar_lea.sflag [#allocation4], %s4812_s25 }
0x1239   : > { %p5583_p3 = pnand %p6802_p12, %p6801_p8 }
0x123b   : > { %5813 = dma.done.wait (!%p5583_p3), %s4813_s19, 128  }
0x123c   : > { %5815 = vsyncadd (!%p5583_p3), %s4813_s19, 4294967168  ;;  %p22_p7 = scmp.ge.s32.totalorder %s5990_s16, 4   ;;  %s6803_s27 = smov %s5822_s28 }
0x123d   : > { %s6804_s28 = smov %s5826_s29  ;;  %s6805_s29 = smov %s6006_s22 }
0x123e   : > { %s6806_s30 = smov %s5990_s16  ;;  %24 = sbr.rel (!%p22_p7) target bundleno = 6 (0x6), region = 111 }
0x1245   :  { %4818 = vsyncpa [#allocation3], 1 }
0x1246   :  { %4820 = vsyncpa [#allocation3 + $0x1], 1 }
0x1247   :  { %4821 = vsyncpa [#allocation6], 1 }
0x1248   :  { %4822 = vsyncpa [#allocation4], 1 }
0x1249   :  { %4824 = vsyncpa [#allocation4 + $0x1], 1 }

</bundles_post_ra>
